<compile_context>
chip_gen: v6e
topology: v6e:2x2x1
jax: 0.10.0
libtpu: 0.0.40
codegen_flags: <defaults>
</compile_context>

<pallas_src>
import jax
import jax.numpy as jnp
from jax.experimental import pallas as pl
from jax.experimental.pallas import tpu as pltpu

EPS = 1e-5


def _round_up(n, m):
    return ((n + m - 1) // m) * m


def _vmem_capacity_bytes():
    try:
        return int(pltpu.get_tpu_info().vmem_capacity_bytes)
    except Exception:
        return 64 * 1024 * 1024  # conservative (v7x-sized) fallback


def _pick_bt(B, Sp, target_rows):
    """Largest divisor of B with Bt*Sp <= target_rows, keeping >=2 parallel grid
    steps (v7x has 2 TensorCores) and preferring MXU-friendly row counts."""
    cands = []
    for d in range(1, B + 1):
        if B % d != 0:
            continue
        if B >= 2 and B // d < 2:
            continue
        if d * Sp <= target_rows:
            cands.append(d)
    if not cands:
        return 1
    return max(cands, key=lambda d: ((d * Sp) % 256 == 0, (d * Sp) % 128 == 0, d))


def _pick_th(Hp):
    for cand in (512, 384, 256, 128):
        if Hp % cand == 0:
            return cand
    return Hp


def _make_kernel(e_real: int, s_real: int, approx_recip: bool):
    """Encoder kernel closed over real (unpadded) embed/seq sizes."""
    inv_e = 1.0 / float(e_real)

    def layernorm(h, gamma, beta, mask):
        # Mask before the mean too -- do not rely on padded columns being zero.
        h = h * mask
        mu = jnp.sum(h, axis=-1, keepdims=True) * inv_e
        diff = (h - mu) * mask
        var = jnp.sum(diff * diff, axis=-1, keepdims=True) * inv_e
        return diff * jax.lax.rsqrt(var + EPS) * gamma + beta

    def kernel(x_ref, wqkv_ref, bqkv_ref, g1_ref, be1_ref,
               w1_ref, bf1_ref, w2_ref, bf2_ref, g2_ref, be2_ref,
               o_ref, x1_ref, acc_ref):
        Bt, Sp, Ep = x_ref.shape
        hi = pl.program_id(1)
        nh = pl.num_programs(1)

        col = jax.lax.broadcasted_iota(jnp.int32, (1, Ep), 1)
        emask = (col < e_real).astype(jnp.float32)

        # ---- first H-step: QKV projection, attention, residual + LayerNorm 1 ----
        @pl.when(hi == 0)
        def _attn_and_norm1():
            x = x_ref[...]                                  # (Bt, Sp, Ep) bf16
            xf = x.reshape(Bt * Sp, Ep)

            qkv = jnp.dot(xf, wqkv_ref[...], preferred_element_type=jnp.float32)
            qkv = qkv + bqkv_ref[...]
            q = qkv[:, :Ep].reshape(Bt, Sp, Ep).astype(jnp.bfloat16)
            k = qkv[:, Ep:2 * Ep].reshape(Bt, Sp, Ep).astype(jnp.bfloat16)
            v = qkv[:, 2 * Ep:].reshape(Bt, Sp, Ep).astype(jnp.bfloat16)

            # 1/sqrt(E) scale already folded into wq/bq in the wrapper.
            s = jnp.einsum('bqd,bkd->bqk', q, k, preferred_element_type=jnp.float32)
            if Sp != s_real:  # mask padded key positions
                kcol = jax.lax.broadcasted_iota(jnp.int32, (1, 1, Sp), 2)
                s = jnp.where(kcol < s_real, s, -1e30)
            m = jnp.max(s, axis=-1, keepdims=True)
            p = jnp.exp(s - m)
            denom = jnp.sum(p, axis=-1, keepdims=True)
            if approx_recip:
                attn = p * pl.reciprocal(denom, approx=True)
            else:
                attn = p / denom
            a = jnp.einsum('bqk,bkd->bqd', attn.astype(jnp.bfloat16), v,
                           preferred_element_type=jnp.float32)
            af = a.reshape(Bt * Sp, Ep)

            x1_ref[...] = layernorm(af + xf.astype(jnp.float32),
                                    g1_ref[...], be1_ref[...], emask)
            acc_ref[...] = jnp.zeros_like(acc_ref)

        # ---- every H-step: FFN tile relu(x1 @ w1_h + b1_h) @ w2_h, f32 accumulate ----
        x1b = x1_ref[...].astype(jnp.bfloat16)
        h = jnp.dot(x1b, w1_ref[...], preferred_element_type=jnp.float32) + bf1_ref[...]
        h = jnp.maximum(h, 0.0)
        acc_ref[...] += jnp.dot(h.astype(jnp.bfloat16), w2_ref[...],
                                preferred_element_type=jnp.float32)

        # ---- last H-step: residual + LayerNorm 2, write output ----
        @pl.when(hi == nh - 1)
        def _norm2_and_store():
            ff = acc_ref[...] + bf2_ref[...]
            x2 = layernorm(ff + x1_ref[...], g2_ref[...], be2_ref[...], emask)
            o_ref[...] = x2.reshape(Bt, Sp, Ep).astype(o_ref.dtype)

    return kernel


def _pack_params(p, E, H):
    """Fold attention scale, fuse QKV, zero-pad to 128-lane-dense, cast weights to bf16."""
    Ep = _round_up(E, 128)
    Hp = _round_up(H, 128)
    scale = 1.0 / (E ** 0.5)

    def pad2(w, r, c):
        return jnp.pad(w, ((0, r - w.shape[0]), (0, c - w.shape[1])))

    wqkv = jnp.concatenate([pad2(p["wq"] * scale, Ep, Ep),
                            pad2(p["wk"], Ep, Ep),
                            pad2(p["wv"], Ep, Ep)], axis=1).astype(jnp.bfloat16)
    bqkv = jnp.concatenate([pad2(p["bq"] * scale, 1, Ep),
                            pad2(p["bk"], 1, Ep),
                            pad2(p["bv"], 1, Ep)], axis=1)                # f32
    packed = dict(
        wqkv=wqkv, bqkv=bqkv,
        g1=pad2(p["g1"], 1, Ep), be1=pad2(p["be1"], 1, Ep),
        w1=pad2(p["w1"], Ep, Hp).astype(jnp.bfloat16), bf1=pad2(p["bf1"], 1, Hp),
        w2=pad2(p["w2"], Hp, Ep).astype(jnp.bfloat16), bf2=pad2(p["bf2"], 1, Ep),
        g2=pad2(p["g2"], 1, Ep), be2=pad2(p["be2"], 1, Ep),
    )
    return packed, Ep, Hp


def single_encoder_layer(x, params, approx_recip=True):
    """x: (B, S, E) float32. params: dict of pre-transposed (in, out) weights.
    Returns (B, S, E) bfloat16 (halved HBM writeback vs f32)."""
    B, S, E = x.shape
    H = params["w1"].shape[1]
    packed, Ep, Hp = _pack_params(params, E, H)
    Sp = _round_up(S, 8)  # keep (Bt*Sp, Ep) <-> (Bt, Sp, Ep) reshapes layout no-ops

    vmem_cap = _vmem_capacity_bytes()
    vmem_limit = min(vmem_cap - 12 * 1024 * 1024, 112 * 1024 * 1024)
    target_rows = 512 if vmem_cap >= 96 * 1024 * 1024 else 256

    Bt = _pick_bt(B, Sp, target_rows)
    nb = B // Bt
    th = _pick_th(Hp)
    nh = Hp // th

    if (Sp, Ep) != (S, E):
        xp = jnp.pad(x, ((0, 0), (0, Sp - S), (0, Ep - E)))
    else:
        xp = x
    xp = xp.astype(jnp.bfloat16)

    flops = 2 * B * Sp * (3 * Ep * Ep + 2 * Sp * Ep + 2 * Ep * Hp)
    bytes_accessed = (int(xp.size) * 2 + B * Sp * Ep * 2
                      + sum(int(v.size) * v.dtype.itemsize for v in packed.values()))
    cost = pl.CostEstimate(flops=flops, transcendentals=B * Sp * Sp,
                           bytes_accessed=bytes_accessed)

    def _build_and_call(use_single_buffer):
        sb = pl.Buffered(1) if use_single_buffer else None             # constant specs
        wb = pl.Buffered(1) if (use_single_buffer and nh == 1) else None  # H-tiled specs

        def const2(r, c):
            return pl.BlockSpec((r, c), lambda b, h: (0, 0), pipeline_mode=sb)

        in_specs = [
            pl.BlockSpec((Bt, Sp, Ep), lambda b, h: (b, 0, 0)),              # x
            const2(Ep, 3 * Ep), const2(1, 3 * Ep),                           # fused QKV w, b
            const2(1, Ep), const2(1, Ep),                                    # norm1 gamma, beta
            pl.BlockSpec((Ep, th), lambda b, h: (0, h), pipeline_mode=wb),   # ff w1 tile
            pl.BlockSpec((1, th), lambda b, h: (0, h), pipeline_mode=wb),    # ff b1 tile
            pl.BlockSpec((th, Ep), lambda b, h: (h, 0), pipeline_mode=wb),   # ff w2 tile
            const2(1, Ep),                                                   # ff b2
            const2(1, Ep), const2(1, Ep),                                    # norm2 gamma, beta
        ]
        out_specs = pl.BlockSpec((Bt, Sp, Ep), lambda b, h: (b, 0, 0))

        return pl.pallas_call(
            _make_kernel(E, S, approx_recip),
            out_shape=jax.ShapeDtypeStruct((B, Sp, Ep), jnp.bfloat16),
            grid_spec=pltpu.PrefetchScalarGridSpec(
                num_scalar_prefetch=0,
                grid=(nb, nh),
                in_specs=in_specs,
                out_specs=out_specs,
                scratch_shapes=[pltpu.VMEM((Bt * Sp, Ep), jnp.float32),   # LN1 output carry
                                pltpu.VMEM((Bt * Sp, Ep), jnp.float32)]), # FFN f32 accumulator
            compiler_params=pltpu.CompilerParams(
                dimension_semantics=("parallel", "arbitrary"),
                vmem_limit_bytes=vmem_limit),
            cost_estimate=cost,
        )(xp, packed["wqkv"], packed["bqkv"], packed["g1"], packed["be1"],
          packed["w1"], packed["bf1"], packed["w2"], packed["bf2"],
          packed["g2"], packed["be2"])

    try:
        out = jax.block_until_ready(_build_and_call(True))
    except Exception:
        # pipeline_mode / Buffered(1) support can vary across jax builds; fall back to
        # default double-buffered specs (identical math, slightly higher VMEM).
        out = jax.block_until_ready(_build_and_call(False))

    if (Sp, Ep) == (S, E):
        return out
    return out[:, :S, :E]


def init_params(key, embed_size):
    E = embed_size
    H = 4 * E
    ks = jax.random.split(key, 8)

    def lin(k, fan_in, fan_out):
        bound = 1.0 / (fan_in ** 0.5)
        kw, kb = jax.random.split(k)
        # stored pre-transposed to (in, out)
        w = jax.random.uniform(kw, (fan_in, fan_out), jnp.float32, -bound, bound)
        b = jax.random.uniform(kb, (1, fan_out), jnp.float32, -bound, bound)
        return w, b

    wq, bq = lin(ks[0], E, E)
    wk, bk = lin(ks[1], E, E)
    wv, bv = lin(ks[2], E, E)
    w1, bf1 = lin(ks[3], E, H)
    w2, bf2 = lin(ks[4], H, E)
    g1 = jnp.ones((1, E), jnp.float32)
    be1 = jnp.zeros((1, E), jnp.float32)
    g2 = jnp.ones((1, E), jnp.float32)
    be2 = jnp.zeros((1, E), jnp.float32)
    return dict(wq=wq, bq=bq, wk=wk, bk=bk, wv=wv, bv=bv,
                g1=g1, be1=be1, w1=w1, bf1=bf1, w2=w2, bf2=bf2,
                g2=g2, be2=be2)


def _layernorm_ref(h, gamma, beta):
    mu = jnp.mean(h, axis=-1, keepdims=True)
    var = jnp.mean((h - mu) ** 2, axis=-1, keepdims=True)
    return (h - mu) * jax.lax.rsqrt(var + EPS) * gamma + beta


def reference(x, p):
    """Pure-JAX reference mirroring the kernel's bf16-operand / f32-accumulate math."""
    E = x.shape[-1]
    bf = jnp.bfloat16
    scale = 1.0 / (E ** 0.5)
    xc = x.astype(bf)

    def mm(a, w):
        return jnp.einsum('...i,ij->...j', a.astype(bf), w.astype(bf),
                          preferred_element_type=jnp.float32)

    q = mm(xc, p["wq"] * scale) + p["bq"] * scale
    k = mm(xc, p["wk"]) + p["bk"]
    v = mm(xc, p["wv"]) + p["bv"]
    s = jnp.einsum('bqd,bkd->bqk', q.astype(bf), k.astype(bf),
                   preferred_element_type=jnp.float32)
    attn = jax.nn.softmax(s, axis=-1)
    a = jnp.einsum('bqk,bkd->bqd', attn.astype(bf), v.astype(bf),
                   preferred_element_type=jnp.float32)
    x1 = _layernorm_ref(a + xc.astype(jnp.float32), p["g1"], p["be1"])
    h = jnp.maximum(mm(x1, p["w1"]) + p["bf1"], 0.0)
    ff = mm(h, p["w2"]) + p["bf2"]
    return _layernorm_ref(ff + x1, p["g2"], p["be2"])


if __name__ == "__main__":
    B, S, E = 2, 8, 32
    key = jax.random.PRNGKey(0)
    kx, kp = jax.random.split(key)
    x = jax.random.normal(kx, (B, S, E), jnp.float32)
    params = init_params(kp, E)

    out = jax.block_until_ready(single_encoder_layer(x, params))
    ref = jax.block_until_ready(reference(x, params))

    assert out.shape == (B, S, E)
    # bf16 matmul operands, bf16 output and approx softmax reciprocal -> loosened tolerance.
    assert jnp.allclose(out.astype(jnp.float32), ref, atol=3e-2, rtol=3e-2), \
        "mismatch vs JAX reference"
    print("KERNEL_OK")
</pallas_src>

<mosaic_0001>
module attributes {stable_mosaic.version = 11 : i64} {
  func.func @kernel(%arg0: i32, %arg1: i32, %arg2: memref<1x8x128xbf16, #tpu.memory_space<vmem>>, %arg3: memref<128x384xbf16, #tpu.memory_space<vmem>>, %arg4: memref<1x384xf32, #tpu.memory_space<vmem>>, %arg5: memref<1x128xf32, #tpu.memory_space<vmem>>, %arg6: memref<1x128xf32, #tpu.memory_space<vmem>>, %arg7: memref<128x128xbf16, #tpu.memory_space<vmem>>, %arg8: memref<1x128xf32, #tpu.memory_space<vmem>>, %arg9: memref<128x128xbf16, #tpu.memory_space<vmem>>, %arg10: memref<1x128xf32, #tpu.memory_space<vmem>>, %arg11: memref<1x128xf32, #tpu.memory_space<vmem>>, %arg12: memref<1x128xf32, #tpu.memory_space<vmem>>, %arg13: memref<1x8x128xbf16, #tpu.memory_space<vmem>>, %arg14: memref<8x128xf32, #tpu.memory_space<vmem>>, %arg15: memref<8x128xf32, #tpu.memory_space<vmem>>) attributes {dimension_semantics = [#tpu.dimension_semantics<parallel>, #tpu.dimension_semantics<arbitrary>], iteration_bounds = array<i64: 2, 1>, scalar_prefetch = 0 : i64, scratch_operands = 2 : i64, tpu.core_type = #tpu.core_type<tc>, window_params = [{transform_indices = @transform_0, window_bounds = array<i64: 1, 8, 128>}, {pipeline_mode = #tpu.pipeline_mode<synchronous>, transform_indices = @transform_1, window_bounds = array<i64: 128, 384>}, {pipeline_mode = #tpu.pipeline_mode<synchronous>, transform_indices = @transform_2, window_bounds = array<i64: 1, 384>}, {pipeline_mode = #tpu.pipeline_mode<synchronous>, transform_indices = @transform_3, window_bounds = array<i64: 1, 128>}, {pipeline_mode = #tpu.pipeline_mode<synchronous>, transform_indices = @transform_4, window_bounds = array<i64: 1, 128>}, {pipeline_mode = #tpu.pipeline_mode<synchronous>, transform_indices = @transform_5, window_bounds = array<i64: 128, 128>}, {pipeline_mode = #tpu.pipeline_mode<synchronous>, transform_indices = @transform_6, window_bounds = array<i64: 1, 128>}, {pipeline_mode = #tpu.pipeline_mode<synchronous>, transform_indices = @transform_7, window_bounds = array<i64: 128, 128>}, {pipeline_mode = #tpu.pipeline_mode<synchronous>, transform_indices = @transform_8, window_bounds = array<i64: 1, 128>}, {pipeline_mode = #tpu.pipeline_mode<synchronous>, transform_indices = @transform_9, window_bounds = array<i64: 1, 128>}, {pipeline_mode = #tpu.pipeline_mode<synchronous>, transform_indices = @transform_10, window_bounds = array<i64: 1, 128>}, {transform_indices = @transform_11, window_bounds = array<i64: 1, 8, 128>}]} {
    %0 = tpu.iota {dimensions = array<i32: 1>} : vector<1x128xi32>
    %c32_i32 = arith.constant 32 : i32
    %1 = vector.broadcast %c32_i32 : i32 to vector<1x128xi32>
    %2 = arith.cmpi slt, %0, %1 : vector<1x128xi32>
    %3 = arith.extui %2 : vector<1x128xi1> to vector<1x128xi32>
    %4 = arith.sitofp %3 : vector<1x128xi32> to vector<1x128xf32>
    %c0_i32 = arith.constant 0 : i32
    %5 = arith.cmpi eq, %arg1, %c0_i32 : i32
    %6 = arith.extui %5 : i1 to i32
    %c0_i32_0 = arith.constant 0 : i32
    %7 = arith.cmpi ne, %6, %c0_i32_0 : i32
    scf.if %7 {
      %c0_16 = arith.constant 0 : index
      %c0_17 = arith.constant 0 : index
      %c0_18 = arith.constant 0 : index
      %26 = vector.load %arg2[%c0_16, %c0_17, %c0_18] : memref<1x8x128xbf16, #tpu.memory_space<vmem>>, vector<1x8x128xbf16>
      %27 = vector.shape_cast %26 : vector<1x8x128xbf16> to vector<8x128xbf16>
      %c0_19 = arith.constant 0 : index
      %c0_20 = arith.constant 0 : index
      %28 = vector.load %arg3[%c0_19, %c0_20] : memref<128x384xbf16, #tpu.memory_space<vmem>>, vector<128x384xbf16>
      %cst_21 = arith.constant dense<0.000000e+00> : vector<8x384xf32>
      %29 = tpu.matmul %27, %28, %cst_21 {dimension_numbers = #tpu.dot_dimension_numbers<[1], [0], [0], [1], [0, 0, 1, 1], [], []>} : vector<8x128xbf16>, vector<128x384xbf16>, vector<8x384xf32> -> vector<8x384xf32>
      %c0_22 = arith.constant 0 : index
      %c0_23 = arith.constant 0 : index
      %30 = vector.load %arg4[%c0_22, %c0_23] : memref<1x384xf32, #tpu.memory_space<vmem>>, vector<1x384xf32>
      %31 = vector.broadcast %30 : vector<1x384xf32> to vector<8x384xf32>
      %32 = arith.addf %29, %31 : vector<8x384xf32>
      %33 = vector.extract_strided_slice %32 {offsets = [0, 0], sizes = [8, 128], strides = [1, 1]} : vector<8x384xf32> to vector<8x128xf32>
      %34 = vector.shape_cast %33 : vector<8x128xf32> to vector<1x8x128xf32>
      %35 = arith.truncf %34 : vector<1x8x128xf32> to vector<1x8x128xbf16>
      %36 = vector.extract_strided_slice %32 {offsets = [0, 128], sizes = [8, 128], strides = [1, 1]} : vector<8x384xf32> to vector<8x128xf32>
      %37 = vector.shape_cast %36 : vector<8x128xf32> to vector<1x8x128xf32>
      %38 = arith.truncf %37 : vector<1x8x128xf32> to vector<1x8x128xbf16>
      %39 = vector.extract_strided_slice %32 {offsets = [0, 256], sizes = [8, 128], strides = [1, 1]} : vector<8x384xf32> to vector<8x128xf32>
      %40 = vector.shape_cast %39 : vector<8x128xf32> to vector<1x8x128xf32>
      %41 = arith.truncf %40 : vector<1x8x128xf32> to vector<1x8x128xbf16>
      "tpu.trace_start"() <{level = 10 : i32, message = "bqd,bkd->bqk"}> : () -> ()
      %cst_24 = arith.constant dense<0.000000e+00> : vector<1x8x8xf32>
      %42 = tpu.matmul %35, %38, %cst_24 {dimension_numbers = #tpu.dot_dimension_numbers<[2], [2], [1], [1], [0, 0, 0, 1, 1, 1], [0], [0]>} : vector<1x8x128xbf16>, vector<1x8x128xbf16>, vector<1x8x8xf32> -> vector<1x8x8xf32>
      "tpu.trace_stop"() : () -> ()
      %cst_25 = arith.constant dense<0xFF800000> : vector<1x8xf32>
      %43 = vector.multi_reduction <maximumf>, %42, %cst_25 [2] : vector<1x8x8xf32> to vector<1x8xf32>
      %44 = vector.shape_cast %43 : vector<1x8xf32> to vector<1x8x1xf32>
      %45 = vector.broadcast %44 : vector<1x8x1xf32> to vector<1x8x8xf32>
      %46 = arith.subf %42, %45 : vector<1x8x8xf32>
      %47 = math.exp %46 : vector<1x8x8xf32>
      %cst_26 = arith.constant dense<0.000000e+00> : vector<1x8xf32>
      %48 = vector.multi_reduction <add>, %47, %cst_26 [2] : vector<1x8x8xf32> to vector<1x8xf32>
      %49 = vector.shape_cast %48 : vector<1x8xf32> to vector<1x8x1xf32>
      %50 = tpu.reciprocal %49 {approx = true} : vector<1x8x1xf32> -> vector<1x8x1xf32>
      %51 = vector.broadcast %50 : vector<1x8x1xf32> to vector<1x8x8xf32>
      %52 = arith.mulf %47, %51 : vector<1x8x8xf32>
      %53 = arith.truncf %52 : vector<1x8x8xf32> to vector<1x8x8xbf16>
      "tpu.trace_start"() <{level = 10 : i32, message = "bqk,bkd->bqd"}> : () -> ()
      %cst_27 = arith.constant dense<0.000000e+00> : vector<1x8x128xf32>
      %54 = tpu.matmul %53, %41, %cst_27 {dimension_numbers = #tpu.dot_dimension_numbers<[2], [1], [1], [2], [0, 0, 0, 1, 1, 2], [0], [0]>} : vector<1x8x8xbf16>, vector<1x8x128xbf16>, vector<1x8x128xf32> -> vector<1x8x128xf32>
      "tpu.trace_stop"() : () -> ()
      %55 = vector.shape_cast %54 : vector<1x8x128xf32> to vector<8x128xf32>
      %56 = arith.extf %27 : vector<8x128xbf16> to vector<8x128xf32>
      %57 = arith.addf %55, %56 : vector<8x128xf32>
      %c0_28 = arith.constant 0 : index
      %c0_29 = arith.constant 0 : index
      %58 = vector.load %arg5[%c0_28, %c0_29] : memref<1x128xf32, #tpu.memory_space<vmem>>, vector<1x128xf32>
      %c0_30 = arith.constant 0 : index
      %c0_31 = arith.constant 0 : index
      %59 = vector.load %arg6[%c0_30, %c0_31] : memref<1x128xf32, #tpu.memory_space<vmem>>, vector<1x128xf32>
      %60 = vector.broadcast %4 : vector<1x128xf32> to vector<8x128xf32>
      %61 = arith.mulf %57, %60 : vector<8x128xf32>
      %cst_32 = arith.constant dense<0.000000e+00> : vector<8xf32>
      %62 = vector.multi_reduction <add>, %61, %cst_32 [1] : vector<8x128xf32> to vector<8xf32>
      %63 = vector.shape_cast %62 : vector<8xf32> to vector<8x1xf32>
      %cst_33 = arith.constant 3.125000e-02 : f32
      %64 = vector.broadcast %cst_33 : f32 to vector<8x1xf32>
      %65 = arith.mulf %63, %64 : vector<8x1xf32>
      %66 = vector.broadcast %65 : vector<8x1xf32> to vector<8x128xf32>
      %67 = arith.subf %61, %66 : vector<8x128xf32>
      %68 = vector.broadcast %4 : vector<1x128xf32> to vector<8x128xf32>
      %69 = arith.mulf %67, %68 : vector<8x128xf32>
      %70 = arith.mulf %69, %69 : vector<8x128xf32>
      %cst_34 = arith.constant dense<0.000000e+00> : vector<8xf32>
      %71 = vector.multi_reduction <add>, %70, %cst_34 [1] : vector<8x128xf32> to vector<8xf32>
      %72 = vector.shape_cast %71 : vector<8xf32> to vector<8x1xf32>
      %cst_35 = arith.constant 3.125000e-02 : f32
      %73 = vector.broadcast %cst_35 : f32 to vector<8x1xf32>
      %74 = arith.mulf %72, %73 : vector<8x1xf32>
      %cst_36 = arith.constant 9.99999974E-6 : f32
      %75 = vector.broadcast %cst_36 : f32 to vector<8x1xf32>
      %76 = arith.addf %74, %75 : vector<8x1xf32>
      %77 = math.rsqrt %76 : vector<8x1xf32>
      %78 = vector.broadcast %77 : vector<8x1xf32> to vector<8x128xf32>
      %79 = arith.mulf %69, %78 : vector<8x128xf32>
      %80 = vector.broadcast %58 : vector<1x128xf32> to vector<8x128xf32>
      %81 = arith.mulf %79, %80 : vector<8x128xf32>
      %82 = vector.broadcast %59 : vector<1x128xf32> to vector<8x128xf32>
      %83 = arith.addf %81, %82 : vector<8x128xf32>
      %c0_37 = arith.constant 0 : index
      %c0_38 = arith.constant 0 : index
      %84 = vector.load %arg14[%c0_37, %c0_38] : memref<8x128xf32, #tpu.memory_space<vmem>>, vector<8x128xf32>
      tpu.vector_store %arg14[%c0_37, %c0_38], %83 {strides = array<i32>} : memref<8x128xf32, #tpu.memory_space<vmem>>, vector<8x128xf32>,
      %cst_39 = arith.constant 0.000000e+00 : f32
      %85 = vector.broadcast %cst_39 : f32 to vector<8x128xf32>
      %c0_40 = arith.constant 0 : index
      %c0_41 = arith.constant 0 : index
      %86 = vector.load %arg15[%c0_40, %c0_41] : memref<8x128xf32, #tpu.memory_space<vmem>>, vector<8x128xf32>
      tpu.vector_store %arg15[%c0_40, %c0_41], %85 {strides = array<i32>} : memref<8x128xf32, #tpu.memory_space<vmem>>, vector<8x128xf32>,
    } else {
    }
    %c0 = arith.constant 0 : index
    %c0_1 = arith.constant 0 : index
    %8 = vector.load %arg14[%c0, %c0_1] : memref<8x128xf32, #tpu.memory_space<vmem>>, vector<8x128xf32>
    %9 = arith.truncf %8 : vector<8x128xf32> to vector<8x128xbf16>
    %c0_2 = arith.constant 0 : index
    %c0_3 = arith.constant 0 : index
    %10 = vector.load %arg7[%c0_2, %c0_3] : memref<128x128xbf16, #tpu.memory_space<vmem>>, vector<128x128xbf16>
    %cst = arith.constant dense<0.000000e+00> : vector<8x128xf32>
    %11 = tpu.matmul %9, %10, %cst {dimension_numbers = #tpu.dot_dimension_numbers<[1], [0], [0], [1], [0, 0, 1, 1], [], []>} : vector<8x128xbf16>, vector<128x128xbf16>, vector<8x128xf32> -> vector<8x128xf32>
    %c0_4 = arith.constant 0 : index
    %c0_5 = arith.constant 0 : index
    %12 = vector.load %arg8[%c0_4, %c0_5] : memref<1x128xf32, #tpu.memory_space<vmem>>, vector<1x128xf32>
    %13 = vector.broadcast %12 : vector<1x128xf32> to vector<8x128xf32>
    %14 = arith.addf %11, %13 : vector<8x128xf32>
    %cst_6 = arith.constant 0.000000e+00 : f32
    %15 = vector.broadcast %cst_6 : f32 to vector<8x128xf32>
    %16 = arith.maximumf %14, %15 : vector<8x128xf32>
    %c0_7 = arith.constant 0 : index
    %c0_8 = arith.constant 0 : index
    %17 = vector.load %arg15[%c0_7, %c0_8] : memref<8x128xf32, #tpu.memory_space<vmem>>, vector<8x128xf32>
    %18 = arith.truncf %16 : vector<8x128xf32> to vector<8x128xbf16>
    %c0_9 = arith.constant 0 : index
    %c0_10 = arith.constant 0 : index
    %19 = vector.load %arg9[%c0_9, %c0_10] : memref<128x128xbf16, #tpu.memory_space<vmem>>, vector<128x128xbf16>
    %cst_11 = arith.constant dense<0.000000e+00> : vector<8x128xf32>
    %20 = tpu.matmul %18, %19, %cst_11 {dimension_numbers = #tpu.dot_dimension_numbers<[1], [0], [0], [1], [0, 0, 1, 1], [], []>} : vector<8x128xbf16>, vector<128x128xbf16>, vector<8x128xf32> -> vector<8x128xf32>
    %21 = arith.addf %17, %20 : vector<8x128xf32>
    %c0_12 = arith.constant 0 : index
    %c0_13 = arith.constant 0 : index
    %22 = vector.load %arg15[%c0_12, %c0_13] : memref<8x128xf32, #tpu.memory_space<vmem>>, vector<8x128xf32>
    tpu.vector_store %arg15[%c0_12, %c0_13], %21 {strides = array<i32>} : memref<8x128xf32, #tpu.memory_space<vmem>>, vector<8x128xf32>,
    %c0_i32_14 = arith.constant 0 : i32
    %23 = arith.cmpi eq, %arg1, %c0_i32_14 : i32
    %24 = arith.extui %23 : i1 to i32
    %c0_i32_15 = arith.constant 0 : i32
    %25 = arith.cmpi ne, %24, %c0_i32_15 : i32
    scf.if %25 {
      %c0_16 = arith.constant 0 : index
      %c0_17 = arith.constant 0 : index
      %26 = vector.load %arg15[%c0_16, %c0_17] : memref<8x128xf32, #tpu.memory_space<vmem>>, vector<8x128xf32>
      %c0_18 = arith.constant 0 : index
      %c0_19 = arith.constant 0 : index
      %27 = vector.load %arg10[%c0_18, %c0_19] : memref<1x128xf32, #tpu.memory_space<vmem>>, vector<1x128xf32>
      %28 = vector.broadcast %27 : vector<1x128xf32> to vector<8x128xf32>
      %29 = arith.addf %26, %28 : vector<8x128xf32>
      %c0_20 = arith.constant 0 : index
      %c0_21 = arith.constant 0 : index
      %30 = vector.load %arg14[%c0_20, %c0_21] : memref<8x128xf32, #tpu.memory_space<vmem>>, vector<8x128xf32>
      %31 = arith.addf %29, %30 : vector<8x128xf32>
      %c0_22 = arith.constant 0 : index
      %c0_23 = arith.constant 0 : index
      %32 = vector.load %arg11[%c0_22, %c0_23] : memref<1x128xf32, #tpu.memory_space<vmem>>, vector<1x128xf32>
      %c0_24 = arith.constant 0 : index
      %c0_25 = arith.constant 0 : index
      %33 = vector.load %arg12[%c0_24, %c0_25] : memref<1x128xf32, #tpu.memory_space<vmem>>, vector<1x128xf32>
      %34 = vector.broadcast %4 : vector<1x128xf32> to vector<8x128xf32>
      %35 = arith.mulf %31, %34 : vector<8x128xf32>
      %cst_26 = arith.constant dense<0.000000e+00> : vector<8xf32>
      %36 = vector.multi_reduction <add>, %35, %cst_26 [1] : vector<8x128xf32> to vector<8xf32>
      %37 = vector.shape_cast %36 : vector<8xf32> to vector<8x1xf32>
      %cst_27 = arith.constant 3.125000e-02 : f32
      %38 = vector.broadcast %cst_27 : f32 to vector<8x1xf32>
      %39 = arith.mulf %37, %38 : vector<8x1xf32>
      %40 = vector.broadcast %39 : vector<8x1xf32> to vector<8x128xf32>
      %41 = arith.subf %35, %40 : vector<8x128xf32>
      %42 = vector.broadcast %4 : vector<1x128xf32> to vector<8x128xf32>
      %43 = arith.mulf %41, %42 : vector<8x128xf32>
      %44 = arith.mulf %43, %43 : vector<8x128xf32>
      %cst_28 = arith.constant dense<0.000000e+00> : vector<8xf32>
      %45 = vector.multi_reduction <add>, %44, %cst_28 [1] : vector<8x128xf32> to vector<8xf32>
      %46 = vector.shape_cast %45 : vector<8xf32> to vector<8x1xf32>
      %cst_29 = arith.constant 3.125000e-02 : f32
      %47 = vector.broadcast %cst_29 : f32 to vector<8x1xf32>
      %48 = arith.mulf %46, %47 : vector<8x1xf32>
      %cst_30 = arith.constant 9.99999974E-6 : f32
      %49 = vector.broadcast %cst_30 : f32 to vector<8x1xf32>
      %50 = arith.addf %48, %49 : vector<8x1xf32>
      %51 = math.rsqrt %50 : vector<8x1xf32>
      %52 = vector.broadcast %51 : vector<8x1xf32> to vector<8x128xf32>
      %53 = arith.mulf %43, %52 : vector<8x128xf32>
      %54 = vector.broadcast %32 : vector<1x128xf32> to vector<8x128xf32>
      %55 = arith.mulf %53, %54 : vector<8x128xf32>
      %56 = vector.broadcast %33 : vector<1x128xf32> to vector<8x128xf32>
      %57 = arith.addf %55, %56 : vector<8x128xf32>
      %58 = vector.shape_cast %57 : vector<8x128xf32> to vector<1x8x128xf32>
      %59 = arith.truncf %58 : vector<1x8x128xf32> to vector<1x8x128xbf16>
      %c0_31 = arith.constant 0 : index
      %c0_32 = arith.constant 0 : index
      %c0_33 = arith.constant 0 : index
      %60 = vector.load %arg13[%c0_31, %c0_32, %c0_33] : memref<1x8x128xbf16, #tpu.memory_space<vmem>>, vector<1x8x128xbf16>
      tpu.vector_store %arg13[%c0_31, %c0_32, %c0_33], %59 {strides = array<i32>} : memref<1x8x128xbf16, #tpu.memory_space<vmem>>, vector<1x8x128xbf16>,
    } else {
    }
    return
  }
  func.func @transform_0(%arg0: i32, %arg1: i32) -> (i32, i32, i32) {
    %c0_i32 = arith.constant 0 : i32
    %c0_i32_0 = arith.constant 0 : i32
    %c0_i32_1 = arith.constant 0 : i32
    return %arg0, %c0_i32, %c0_i32_0 : i32, i32, i32
  }
  func.func @transform_1(%arg0: i32, %arg1: i32) -> (i32, i32) {
    %c0_i32 = arith.constant 0 : i32
    %c0_i32_0 = arith.constant 0 : i32
    %c0_i32_1 = arith.constant 0 : i32
    return %c0_i32, %c0_i32_0 : i32, i32
  }
  func.func @transform_2(%arg0: i32, %arg1: i32) -> (i32, i32) {
    %c0_i32 = arith.constant 0 : i32
    %c0_i32_0 = arith.constant 0 : i32
    %c0_i32_1 = arith.constant 0 : i32
    return %c0_i32, %c0_i32_0 : i32, i32
  }
  func.func @transform_3(%arg0: i32, %arg1: i32) -> (i32, i32) {
    %c0_i32 = arith.constant 0 : i32
    %c0_i32_0 = arith.constant 0 : i32
    %c0_i32_1 = arith.constant 0 : i32
    return %c0_i32, %c0_i32_0 : i32, i32
  }
  func.func @transform_4(%arg0: i32, %arg1: i32) -> (i32, i32) {
    %c0_i32 = arith.constant 0 : i32
    %c0_i32_0 = arith.constant 0 : i32
    %c0_i32_1 = arith.constant 0 : i32
    return %c0_i32, %c0_i32_0 : i32, i32
  }
  func.func @transform_5(%arg0: i32, %arg1: i32) -> (i32, i32) {
    %c0_i32 = arith.constant 0 : i32
    %c0_i32_0 = arith.constant 0 : i32
    return %c0_i32, %arg1 : i32, i32
  }
  func.func @transform_6(%arg0: i32, %arg1: i32) -> (i32, i32) {
    %c0_i32 = arith.constant 0 : i32
    %c0_i32_0 = arith.constant 0 : i32
    return %c0_i32, %arg1 : i32, i32
  }
  func.func @transform_7(%arg0: i32, %arg1: i32) -> (i32, i32) {
    %c0_i32 = arith.constant 0 : i32
    %c0_i32_0 = arith.constant 0 : i32
    return %arg1, %c0_i32 : i32, i32
  }
  func.func @transform_8(%arg0: i32, %arg1: i32) -> (i32, i32) {
    %c0_i32 = arith.constant 0 : i32
    %c0_i32_0 = arith.constant 0 : i32
    %c0_i32_1 = arith.constant 0 : i32
    return %c0_i32, %c0_i32_0 : i32, i32
  }
  func.func @transform_9(%arg0: i32, %arg1: i32) -> (i32, i32) {
    %c0_i32 = arith.constant 0 : i32
    %c0_i32_0 = arith.constant 0 : i32
    %c0_i32_1 = arith.constant 0 : i32
    return %c0_i32, %c0_i32_0 : i32, i32
  }
  func.func @transform_10(%arg0: i32, %arg1: i32) -> (i32, i32) {
    %c0_i32 = arith.constant 0 : i32
    %c0_i32_0 = arith.constant 0 : i32
    %c0_i32_1 = arith.constant 0 : i32
    return %c0_i32, %c0_i32_0 : i32, i32
  }
  func.func @transform_11(%arg0: i32, %arg1: i32) -> (i32, i32, i32) {
    %c0_i32 = arith.constant 0 : i32
    %c0_i32_0 = arith.constant 0 : i32
    %c0_i32_1 = arith.constant 0 : i32
    return %arg0, %c0_i32, %c0_i32_0 : i32, i32, i32
  }
}

module attributes {stable_mosaic.version = 11 : i64} {
  func.func @kernel(%arg0: i32, %arg1: i32, %arg2: memref<1x8x128xbf16, #tpu.memory_space<vmem>>, %arg3: memref<128x384xbf16, #tpu.memory_space<vmem>>, %arg4: memref<1x384xf32, #tpu.memory_space<vmem>>, %arg5: memref<1x128xf32, #tpu.memory_space<vmem>>, %arg6: memref<1x128xf32, #tpu.memory_space<vmem>>, %arg7: memref<128x128xbf16, #tpu.memory_space<vmem>>, %arg8: memref<1x128xf32, #tpu.memory_space<vmem>>, %arg9: memref<128x128xbf16, #tpu.memory_space<vmem>>, %arg10: memref<1x128xf32, #tpu.memory_space<vmem>>, %arg11: memref<1x128xf32, #tpu.memory_space<vmem>>, %arg12: memref<1x128xf32, #tpu.memory_space<vmem>>, %arg13: memref<1x8x128xbf16, #tpu.memory_space<vmem>>, %arg14: memref<8x128xf32, #tpu.memory_space<vmem>>, %arg15: memref<8x128xf32, #tpu.memory_space<vmem>>) attributes {dimension_semantics = [#tpu.dimension_semantics<parallel>, #tpu.dimension_semantics<arbitrary>], iteration_bounds = array<i64: 2, 1>, scalar_prefetch = 0 : i64, scratch_operands = 2 : i64, tpu.core_type = #tpu.core_type<tc>, window_params = [{transform_indices = @transform_0, window_bounds = array<i64: 1, 8, 128>}, {pipeline_mode = #tpu.pipeline_mode<synchronous>, transform_indices = @transform_1, window_bounds = array<i64: 128, 384>}, {pipeline_mode = #tpu.pipeline_mode<synchronous>, transform_indices = @transform_2, window_bounds = array<i64: 1, 384>}, {pipeline_mode = #tpu.pipeline_mode<synchronous>, transform_indices = @transform_3, window_bounds = array<i64: 1, 128>}, {pipeline_mode = #tpu.pipeline_mode<synchronous>, transform_indices = @transform_4, window_bounds = array<i64: 1, 128>}, {transform_indices = @transform_5, window_bounds = array<i64: 128, 128>}, {transform_indices = @transform_6, window_bounds = array<i64: 1, 128>}, {transform_indices = @transform_7, window_bounds = array<i64: 128, 128>}, {pipeline_mode = #tpu.pipeline_mode<synchronous>, transform_indices = @transform_8, window_bounds = array<i64: 1, 128>}, {pipeline_mode = #tpu.pipeline_mode<synchronous>, transform_indices = @transform_9, window_bounds = array<i64: 1, 128>}, {pipeline_mode = #tpu.pipeline_mode<synchronous>, transform_indices = @transform_10, window_bounds = array<i64: 1, 128>}, {transform_indices = @transform_11, window_bounds = array<i64: 1, 8, 128>}]} {
    %0 = tpu.iota {dimensions = array<i32: 1>} : vector<1x128xi32>
    %c32_i32 = arith.constant 32 : i32
    %1 = vector.broadcast %c32_i32 : i32 to vector<1x128xi32>
    %2 = arith.cmpi slt, %0, %1 : vector<1x128xi32>
    %3 = arith.extui %2 : vector<1x128xi1> to vector<1x128xi32>
    %4 = arith.sitofp %3 : vector<1x128xi32> to vector<1x128xf32>
    %c0_i32 = arith.constant 0 : i32
    %5 = arith.cmpi eq, %arg1, %c0_i32 : i32
    %6 = arith.extui %5 : i1 to i32
    %c0_i32_0 = arith.constant 0 : i32
    %7 = arith.cmpi ne, %6, %c0_i32_0 : i32
    scf.if %7 {
      %c0_16 = arith.constant 0 : index
      %c0_17 = arith.constant 0 : index
      %c0_18 = arith.constant 0 : index
      %26 = vector.load %arg2[%c0_16, %c0_17, %c0_18] : memref<1x8x128xbf16, #tpu.memory_space<vmem>>, vector<1x8x128xbf16>
      %27 = vector.shape_cast %26 : vector<1x8x128xbf16> to vector<8x128xbf16>
      %c0_19 = arith.constant 0 : index
      %c0_20 = arith.constant 0 : index
      %28 = vector.load %arg3[%c0_19, %c0_20] : memref<128x384xbf16, #tpu.memory_space<vmem>>, vector<128x384xbf16>
      %cst_21 = arith.constant dense<0.000000e+00> : vector<8x384xf32>
      %29 = tpu.matmul %27, %28, %cst_21 {dimension_numbers = #tpu.dot_dimension_numbers<[1], [0], [0], [1], [0, 0, 1, 1], [], []>} : vector<8x128xbf16>, vector<128x384xbf16>, vector<8x384xf32> -> vector<8x384xf32>
      %c0_22 = arith.constant 0 : index
      %c0_23 = arith.constant 0 : index
      %30 = vector.load %arg4[%c0_22, %c0_23] : memref<1x384xf32, #tpu.memory_space<vmem>>, vector<1x384xf32>
      %31 = vector.broadcast %30 : vector<1x384xf32> to vector<8x384xf32>
      %32 = arith.addf %29, %31 : vector<8x384xf32>
      %33 = vector.extract_strided_slice %32 {offsets = [0, 0], sizes = [8, 128], strides = [1, 1]} : vector<8x384xf32> to vector<8x128xf32>
      %34 = vector.shape_cast %33 : vector<8x128xf32> to vector<1x8x128xf32>
      %35 = arith.truncf %34 : vector<1x8x128xf32> to vector<1x8x128xbf16>
      %36 = vector.extract_strided_slice %32 {offsets = [0, 128], sizes = [8, 128], strides = [1, 1]} : vector<8x384xf32> to vector<8x128xf32>
      %37 = vector.shape_cast %36 : vector<8x128xf32> to vector<1x8x128xf32>
      %38 = arith.truncf %37 : vector<1x8x128xf32> to vector<1x8x128xbf16>
      %39 = vector.extract_strided_slice %32 {offsets = [0, 256], sizes = [8, 128], strides = [1, 1]} : vector<8x384xf32> to vector<8x128xf32>
      %40 = vector.shape_cast %39 : vector<8x128xf32> to vector<1x8x128xf32>
      %41 = arith.truncf %40 : vector<1x8x128xf32> to vector<1x8x128xbf16>
      "tpu.trace_start"() <{level = 10 : i32, message = "bqd,bkd->bqk"}> : () -> ()
      %cst_24 = arith.constant dense<0.000000e+00> : vector<1x8x8xf32>
      %42 = tpu.matmul %35, %38, %cst_24 {dimension_numbers = #tpu.dot_dimension_numbers<[2], [2], [1], [1], [0, 0, 0, 1, 1, 1], [0], [0]>} : vector<1x8x128xbf16>, vector<1x8x128xbf16>, vector<1x8x8xf32> -> vector<1x8x8xf32>
      "tpu.trace_stop"() : () -> ()
      %cst_25 = arith.constant dense<0xFF800000> : vector<1x8xf32>
      %43 = vector.multi_reduction <maximumf>, %42, %cst_25 [2] : vector<1x8x8xf32> to vector<1x8xf32>
      %44 = vector.shape_cast %43 : vector<1x8xf32> to vector<1x8x1xf32>
      %45 = vector.broadcast %44 : vector<1x8x1xf32> to vector<1x8x8xf32>
      %46 = arith.subf %42, %45 : vector<1x8x8xf32>
      %47 = math.exp %46 : vector<1x8x8xf32>
      %cst_26 = arith.constant dense<0.000000e+00> : vector<1x8xf32>
      %48 = vector.multi_reduction <add>, %47, %cst_26 [2] : vector<1x8x8xf32> to vector<1x8xf32>
      %49 = vector.shape_cast %48 : vector<1x8xf32> to vector<1x8x1xf32>
      %50 = tpu.reciprocal %49 {approx = true} : vector<1x8x1xf32> -> vector<1x8x1xf32>
      %51 = vector.broadcast %50 : vector<1x8x1xf32> to vector<1x8x8xf32>
      %52 = arith.mulf %47, %51 : vector<1x8x8xf32>
      %53 = arith.truncf %52 : vector<1x8x8xf32> to vector<1x8x8xbf16>
      "tpu.trace_start"() <{level = 10 : i32, message = "bqk,bkd->bqd"}> : () -> ()
      %cst_27 = arith.constant dense<0.000000e+00> : vector<1x8x128xf32>
      %54 = tpu.matmul %53, %41, %cst_27 {dimension_numbers = #tpu.dot_dimension_numbers<[2], [1], [1], [2], [0, 0, 0, 1, 1, 2], [0], [0]>} : vector<1x8x8xbf16>, vector<1x8x128xbf16>, vector<1x8x128xf32> -> vector<1x8x128xf32>
      "tpu.trace_stop"() : () -> ()
      %55 = vector.shape_cast %54 : vector<1x8x128xf32> to vector<8x128xf32>
      %56 = arith.extf %27 : vector<8x128xbf16> to vector<8x128xf32>
      %57 = arith.addf %55, %56 : vector<8x128xf32>
      %c0_28 = arith.constant 0 : index
      %c0_29 = arith.constant 0 : index
      %58 = vector.load %arg5[%c0_28, %c0_29] : memref<1x128xf32, #tpu.memory_space<vmem>>, vector<1x128xf32>
      %c0_30 = arith.constant 0 : index
      %c0_31 = arith.constant 0 : index
      %59 = vector.load %arg6[%c0_30, %c0_31] : memref<1x128xf32, #tpu.memory_space<vmem>>, vector<1x128xf32>
      %60 = vector.broadcast %4 : vector<1x128xf32> to vector<8x128xf32>
      %61 = arith.mulf %57, %60 : vector<8x128xf32>
      %cst_32 = arith.constant dense<0.000000e+00> : vector<8xf32>
      %62 = vector.multi_reduction <add>, %61, %cst_32 [1] : vector<8x128xf32> to vector<8xf32>
      %63 = vector.shape_cast %62 : vector<8xf32> to vector<8x1xf32>
      %cst_33 = arith.constant 3.125000e-02 : f32
      %64 = vector.broadcast %cst_33 : f32 to vector<8x1xf32>
      %65 = arith.mulf %63, %64 : vector<8x1xf32>
      %66 = vector.broadcast %65 : vector<8x1xf32> to vector<8x128xf32>
      %67 = arith.subf %61, %66 : vector<8x128xf32>
      %68 = vector.broadcast %4 : vector<1x128xf32> to vector<8x128xf32>
      %69 = arith.mulf %67, %68 : vector<8x128xf32>
      %70 = arith.mulf %69, %69 : vector<8x128xf32>
      %cst_34 = arith.constant dense<0.000000e+00> : vector<8xf32>
      %71 = vector.multi_reduction <add>, %70, %cst_34 [1] : vector<8x128xf32> to vector<8xf32>
      %72 = vector.shape_cast %71 : vector<8xf32> to vector<8x1xf32>
      %cst_35 = arith.constant 3.125000e-02 : f32
      %73 = vector.broadcast %cst_35 : f32 to vector<8x1xf32>
      %74 = arith.mulf %72, %73 : vector<8x1xf32>
      %cst_36 = arith.constant 9.99999974E-6 : f32
      %75 = vector.broadcast %cst_36 : f32 to vector<8x1xf32>
      %76 = arith.addf %74, %75 : vector<8x1xf32>
      %77 = math.rsqrt %76 : vector<8x1xf32>
      %78 = vector.broadcast %77 : vector<8x1xf32> to vector<8x128xf32>
      %79 = arith.mulf %69, %78 : vector<8x128xf32>
      %80 = vector.broadcast %58 : vector<1x128xf32> to vector<8x128xf32>
      %81 = arith.mulf %79, %80 : vector<8x128xf32>
      %82 = vector.broadcast %59 : vector<1x128xf32> to vector<8x128xf32>
      %83 = arith.addf %81, %82 : vector<8x128xf32>
      %c0_37 = arith.constant 0 : index
      %c0_38 = arith.constant 0 : index
      %84 = vector.load %arg14[%c0_37, %c0_38] : memref<8x128xf32, #tpu.memory_space<vmem>>, vector<8x128xf32>
      tpu.vector_store %arg14[%c0_37, %c0_38], %83 {strides = array<i32>} : memref<8x128xf32, #tpu.memory_space<vmem>>, vector<8x128xf32>,
      %cst_39 = arith.constant 0.000000e+00 : f32
      %85 = vector.broadcast %cst_39 : f32 to vector<8x128xf32>
      %c0_40 = arith.constant 0 : index
      %c0_41 = arith.constant 0 : index
      %86 = vector.load %arg15[%c0_40, %c0_41] : memref<8x128xf32, #tpu.memory_space<vmem>>, vector<8x128xf32>
      tpu.vector_store %arg15[%c0_40, %c0_41], %85 {strides = array<i32>} : memref<8x128xf32, #tpu.memory_space<vmem>>, vector<8x128xf32>,
    } else {
    }
    %c0 = arith.constant 0 : index
    %c0_1 = arith.constant 0 : index
    %8 = vector.load %arg14[%c0, %c0_1] : memref<8x128xf32, #tpu.memory_space<vmem>>, vector<8x128xf32>
    %9 = arith.truncf %8 : vector<8x128xf32> to vector<8x128xbf16>
    %c0_2 = arith.constant 0 : index
    %c0_3 = arith.constant 0 : index
    %10 = vector.load %arg7[%c0_2, %c0_3] : memref<128x128xbf16, #tpu.memory_space<vmem>>, vector<128x128xbf16>
    %cst = arith.constant dense<0.000000e+00> : vector<8x128xf32>
    %11 = tpu.matmul %9, %10, %cst {dimension_numbers = #tpu.dot_dimension_numbers<[1], [0], [0], [1], [0, 0, 1, 1], [], []>} : vector<8x128xbf16>, vector<128x128xbf16>, vector<8x128xf32> -> vector<8x128xf32>
    %c0_4 = arith.constant 0 : index
    %c0_5 = arith.constant 0 : index
    %12 = vector.load %arg8[%c0_4, %c0_5] : memref<1x128xf32, #tpu.memory_space<vmem>>, vector<1x128xf32>
    %13 = vector.broadcast %12 : vector<1x128xf32> to vector<8x128xf32>
    %14 = arith.addf %11, %13 : vector<8x128xf32>
    %cst_6 = arith.constant 0.000000e+00 : f32
    %15 = vector.broadcast %cst_6 : f32 to vector<8x128xf32>
    %16 = arith.maximumf %14, %15 : vector<8x128xf32>
    %c0_7 = arith.constant 0 : index
    %c0_8 = arith.constant 0 : index
    %17 = vector.load %arg15[%c0_7, %c0_8] : memref<8x128xf32, #tpu.memory_space<vmem>>, vector<8x128xf32>
    %18 = arith.truncf %16 : vector<8x128xf32> to vector<8x128xbf16>
    %c0_9 = arith.constant 0 : index
    %c0_10 = arith.constant 0 : index
    %19 = vector.load %arg9[%c0_9, %c0_10] : memref<128x128xbf16, #tpu.memory_space<vmem>>, vector<128x128xbf16>
    %cst_11 = arith.constant dense<0.000000e+00> : vector<8x128xf32>
    %20 = tpu.matmul %18, %19, %cst_11 {dimension_numbers = #tpu.dot_dimension_numbers<[1], [0], [0], [1], [0, 0, 1, 1], [], []>} : vector<8x128xbf16>, vector<128x128xbf16>, vector<8x128xf32> -> vector<8x128xf32>
    %21 = arith.addf %17, %20 : vector<8x128xf32>
    %c0_12 = arith.constant 0 : index
    %c0_13 = arith.constant 0 : index
    %22 = vector.load %arg15[%c0_12, %c0_13] : memref<8x128xf32, #tpu.memory_space<vmem>>, vector<8x128xf32>
    tpu.vector_store %arg15[%c0_12, %c0_13], %21 {strides = array<i32>} : memref<8x128xf32, #tpu.memory_space<vmem>>, vector<8x128xf32>,
    %c0_i32_14 = arith.constant 0 : i32
    %23 = arith.cmpi eq, %arg1, %c0_i32_14 : i32
    %24 = arith.extui %23 : i1 to i32
    %c0_i32_15 = arith.constant 0 : i32
    %25 = arith.cmpi ne, %24, %c0_i32_15 : i32
    scf.if %25 {
      %c0_16 = arith.constant 0 : index
      %c0_17 = arith.constant 0 : index
      %26 = vector.load %arg15[%c0_16, %c0_17] : memref<8x128xf32, #tpu.memory_space<vmem>>, vector<8x128xf32>
      %c0_18 = arith.constant 0 : index
      %c0_19 = arith.constant 0 : index
      %27 = vector.load %arg10[%c0_18, %c0_19] : memref<1x128xf32, #tpu.memory_space<vmem>>, vector<1x128xf32>
      %28 = vector.broadcast %27 : vector<1x128xf32> to vector<8x128xf32>
      %29 = arith.addf %26, %28 : vector<8x128xf32>
      %c0_20 = arith.constant 0 : index
      %c0_21 = arith.constant 0 : index
      %30 = vector.load %arg14[%c0_20, %c0_21] : memref<8x128xf32, #tpu.memory_space<vmem>>, vector<8x128xf32>
      %31 = arith.addf %29, %30 : vector<8x128xf32>
      %c0_22 = arith.constant 0 : index
      %c0_23 = arith.constant 0 : index
      %32 = vector.load %arg11[%c0_22, %c0_23] : memref<1x128xf32, #tpu.memory_space<vmem>>, vector<1x128xf32>
      %c0_24 = arith.constant 0 : index
      %c0_25 = arith.constant 0 : index
      %33 = vector.load %arg12[%c0_24, %c0_25] : memref<1x128xf32, #tpu.memory_space<vmem>>, vector<1x128xf32>
      %34 = vector.broadcast %4 : vector<1x128xf32> to vector<8x128xf32>
      %35 = arith.mulf %31, %34 : vector<8x128xf32>
      %cst_26 = arith.constant dense<0.000000e+00> : vector<8xf32>
      %36 = vector.multi_reduction <add>, %35, %cst_26 [1] : vector<8x128xf32> to vector<8xf32>
      %37 = vector.shape_cast %36 : vector<8xf32> to vector<8x1xf32>
      %cst_27 = arith.constant 3.125000e-02 : f32
      %38 = vector.broadcast %cst_27 : f32 to vector<8x1xf32>
      %39 = arith.mulf %37, %38 : vector<8x1xf32>
      %40 = vector.broadcast %39 : vector<8x1xf32> to vector<8x128xf32>
      %41 = arith.subf %35, %40 : vector<8x128xf32>
      %42 = vector.broadcast %4 : vector<1x128xf32> to vector<8x128xf32>
      %43 = arith.mulf %41, %42 : vector<8x128xf32>
      %44 = arith.mulf %43, %43 : vector<8x128xf32>
      %cst_28 = arith.constant dense<0.000000e+00> : vector<8xf32>
      %45 = vector.multi_reduction <add>, %44, %cst_28 [1] : vector<8x128xf32> to vector<8xf32>
      %46 = vector.shape_cast %45 : vector<8xf32> to vector<8x1xf32>
      %cst_29 = arith.constant 3.125000e-02 : f32
      %47 = vector.broadcast %cst_29 : f32 to vector<8x1xf32>
      %48 = arith.mulf %46, %47 : vector<8x1xf32>
      %cst_30 = arith.constant 9.99999974E-6 : f32
      %49 = vector.broadcast %cst_30 : f32 to vector<8x1xf32>
      %50 = arith.addf %48, %49 : vector<8x1xf32>
      %51 = math.rsqrt %50 : vector<8x1xf32>
      %52 = vector.broadcast %51 : vector<8x1xf32> to vector<8x128xf32>
      %53 = arith.mulf %43, %52 : vector<8x128xf32>
      %54 = vector.broadcast %32 : vector<1x128xf32> to vector<8x128xf32>
      %55 = arith.mulf %53, %54 : vector<8x128xf32>
      %56 = vector.broadcast %33 : vector<1x128xf32> to vector<8x128xf32>
      %57 = arith.addf %55, %56 : vector<8x128xf32>
      %58 = vector.shape_cast %57 : vector<8x128xf32> to vector<1x8x128xf32>
      %59 = arith.truncf %58 : vector<1x8x128xf32> to vector<1x8x128xbf16>
      %c0_31 = arith.constant 0 : index
      %c0_32 = arith.constant 0 : index
      %c0_33 = arith.constant 0 : index
      %60 = vector.load %arg13[%c0_31, %c0_32, %c0_33] : memref<1x8x128xbf16, #tpu.memory_space<vmem>>, vector<1x8x128xbf16>
      tpu.vector_store %arg13[%c0_31, %c0_32, %c0_33], %59 {strides = array<i32>} : memref<1x8x128xbf16, #tpu.memory_space<vmem>>, vector<1x8x128xbf16>,
    } else {
    }
    return
  }
  func.func @transform_0(%arg0: i32, %arg1: i32) -> (i32, i32, i32) {
    %c0_i32 = arith.constant 0 : i32
    %c0_i32_0 = arith.constant 0 : i32
    %c0_i32_1 = arith.constant 0 : i32
    return %arg0, %c0_i32, %c0_i32_0 : i32, i32, i32
  }
  func.func @transform_1(%arg0: i32, %arg1: i32) -> (i32, i32) {
    %c0_i32 = arith.constant 0 : i32
    %c0_i32_0 = arith.constant 0 : i32
    %c0_i32_1 = arith.constant 0 : i32
    return %c0_i32, %c0_i32_0 : i32, i32
  }
  func.func @transform_2(%arg0: i32, %arg1: i32) -> (i32, i32) {
    %c0_i32 = arith.constant 0 : i32
    %c0_i32_0 = arith.constant 0 : i32
    %c0_i32_1 = arith.constant 0 : i32
    return %c0_i32, %c0_i32_0 : i32, i32
  }
  func.func @transform_3(%arg0: i32, %arg1: i32) -> (i32, i32) {
    %c0_i32 = arith.constant 0 : i32
    %c0_i32_0 = arith.constant 0 : i32
    %c0_i32_1 = arith.constant 0 : i32
    return %c0_i32, %c0_i32_0 : i32, i32
  }
  func.func @transform_4(%arg0: i32, %arg1: i32) -> (i32, i32) {
    %c0_i32 = arith.constant 0 : i32
    %c0_i32_0 = arith.constant 0 : i32
    %c0_i32_1 = arith.constant 0 : i32
    return %c0_i32, %c0_i32_0 : i32, i32
  }
  func.func @transform_5(%arg0: i32, %arg1: i32) -> (i32, i32) {
    %c0_i32 = arith.constant 0 : i32
    %c0_i32_0 = arith.constant 0 : i32
    return %c0_i32, %arg1 : i32, i32
  }
  func.func @transform_6(%arg0: i32, %arg1: i32) -> (i32, i32) {
    %c0_i32 = arith.constant 0 : i32
    %c0_i32_0 = arith.constant 0 : i32
    return %c0_i32, %arg1 : i32, i32
  }
  func.func @transform_7(%arg0: i32, %arg1: i32) -> (i32, i32) {
    %c0_i32 = arith.constant 0 : i32
    %c0_i32_0 = arith.constant 0 : i32
    return %arg1, %c0_i32 : i32, i32
  }
  func.func @transform_8(%arg0: i32, %arg1: i32) -> (i32, i32) {
    %c0_i32 = arith.constant 0 : i32
    %c0_i32_0 = arith.constant 0 : i32
    %c0_i32_1 = arith.constant 0 : i32
    return %c0_i32, %c0_i32_0 : i32, i32
  }
  func.func @transform_9(%arg0: i32, %arg1: i32) -> (i32, i32) {
    %c0_i32 = arith.constant 0 : i32
    %c0_i32_0 = arith.constant 0 : i32
    %c0_i32_1 = arith.constant 0 : i32
    return %c0_i32, %c0_i32_0 : i32, i32
  }
  func.func @transform_10(%arg0: i32, %arg1: i32) -> (i32, i32) {
    %c0_i32 = arith.constant 0 : i32
    %c0_i32_0 = arith.constant 0 : i32
    %c0_i32_1 = arith.constant 0 : i32
    return %c0_i32, %c0_i32_0 : i32, i32
  }
  func.func @transform_11(%arg0: i32, %arg1: i32) -> (i32, i32, i32) {
    %c0_i32 = arith.constant 0 : i32
    %c0_i32_0 = arith.constant 0 : i32
    %c0_i32_1 = arith.constant 0 : i32
    return %arg0, %c0_i32, %c0_i32_0 : i32, i32, i32
  }
}

</mosaic_0001>

<bundles_post_ra>
// kernel: tpu_custom_call.1
= control target key start
LH: loop header
LB: loop body
LE: loop exit
PB: predicated region body
PF: predicated region fallthrough
CT: control target
= control target key end

     0   :  { %s2162_s0 = inlined_call_operand.hbm [shape: bf16[2,8,128], index: 0, kind: input, shape index: {}]   ;;  %s2163_s1 = inlined_call_operand.hbm [shape: bf16[128,384], index: 1, kind: input, shape index: {}]   ;;  %s2164_s2 = inlined_call_operand.vmem [shape: f32[1,384], index: 2, kind: input, shape index: {}]   ;;  %s2165_s3 = inlined_call_operand.vmem [shape: f32[1,128], index: 3, kind: input, shape index: {}]   ;;  %s2166_s4 = inlined_call_operand.vmem [shape: f32[1,128], index: 4, kind: input, shape index: {}]   ;;  %s2167_s5 = inlined_call_operand.hbm [shape: bf16[128,128], index: 5, kind: input, shape index: {}]   ;;  %s2168_s6 = inlined_call_operand.vmem [shape: f32[1,128], index: 6, kind: input, shape index: {}]   ;;  %s2169_s7 = inlined_call_operand.hbm [shape: bf16[128,128], index: 7, kind: input, shape index: {}]   ;;  %s2170_s8 = inlined_call_operand.vmem [shape: f32[1,128], index: 8, kind: input, shape index: {}]   ;;  %s2171_s9 = inlined_call_operand.vmem [shape: f32[1,128], index: 9, kind: input, shape index: {}]   ;;  %s2172_s10 = inlined_call_operand.vmem [shape: f32[1,128], index: 10, kind: input, shape index: {}]   ;;  %s2173_s11 = inlined_call_operand.hbm [shape: bf16[2,8,128], index: 11, kind: output, shape index: {}]  }
   0x1   :  { %2181 = sst [smem:[#allocation20_spill]] %s2163_s1 }
   0x2   :  { %2182 = sst [smem:[#allocation21_spill]] %s2167_s5 }
   0x3   :  { %2183 = sst [smem:[#allocation22_spill]] %s2169_s7 }
   0x4   :  { %2184 = sst [smem:[#allocation23_spill]] %s2172_s10 }
   0x5   :  { %2185 = sst [smem:[#allocation24_spill]] %s2173_s11 }
   0x6   :  { %16 = vsyncpa [#allocation5], 0 }
   0x7   :  { %18 = vsyncpa [#allocation5 + $0x1], 0 }
   0x8   :  { %19 = vsyncpa [#allocation8], 0 }
   0x9   :  { %20 = vsyncpa [#allocation11], 0 }
   0xa   :  { %21 = vsyncpa [#allocation6], 0 }
   0xb   :  { %23 = vsyncpa [#allocation6 + $0x1], 0  ;;  %s1891_s17 = smov 0   ;;  %s1893_s18 = smov 0  }
   0xc   :  { %s1895_s19 = smov 0   ;;  %s1897_s20 = smov 0  }
   0xd   :  { %s1899_s21 = smov 0   ;;  %s1901_s22 = smov 0  }
   0xe LB: > { %2186 = sst [smem:[#allocation17_spill]] %s1797_s17  ;;  %s1296_s23 = sadd.s32 4294967295, %s1817_s22   ;;  %s1817_s22 = sphi %s1901_s22, %s29_s22   ;;  %s1813_s21 = sphi %s1899_s21, %s2214_s21   ;;  %s1809_s20 = sphi %s1897_s20, %s2213_s20   ;;  %s1805_s19 = sphi %s1895_s19, %s2212_s19   ;;  %s1801_s18 = sphi %s1893_s18, %s2211_s18   ;;  %s1797_s17 = sphi %s1891_s17, %s2210_s17  }
   0xf   : > { %s1297_s24 = sadd.s32 4294967294, %s1817_s22   ;;  %p61_p0 = scmp.ne.s32.totalorder %s1801_s18, %s1797_s17 }
  0x10   : > { %p1925_p1 = scmp.eq.s32.totalorder %s1296_s23, 0  ;;  %p1929_p2 = scmp.eq.s32.totalorder %s1296_s23, 1 }
  0x11   : > { %p316_p3 = scmp.eq.s32.totalorder %s1297_s24, 1  ;;  %p1298_p5 = scmp.ge.s32.totalorder %s1817_s22, 1 }
  0x12   : > { %s2187_s25 = scalar_select %p1925_p1, 1, 0 }
  0x13   : > { %p1935_p4 = por %p1925_p1, %p61_p0  ;;  %p1940_p6 = por %p316_p3, %p61_p0 }
  0x14   : > { %p323_p7 = scmp.lt.s32.totalorder %s1817_s22, 3  ;;  %s1819_s30 = smov [#allocation7]  }
  0x15   : > { %s2189_s27 = scalar_select %p1935_p4, 1, 0 }
  0x16   : > { %s2190_s28 = scalar_select %p1940_p6, 1, 0 }
  0x17   : > { %p1945_p8 = pnand %p1298_p5, %p323_p7  ;;  %s335_s12 = sshll.u32 %s1819_s30, 4  ;;  %s336_s12 = int_to_ptr.vmem [resolvable:$true] %s335_s12 }
  0x18   : > { %2191 = sst [smem:[#allocation18_spill]] %s2190_s28  ;;  %s1820_s14 = smov [#allocation9]  }
  0x19   : > { %p1483_p9 = pneg %p1945_p8  ;;  %s359_s15 = sshll.u32 %s1820_s14, 4  ;;  %s360_s15 = int_to_ptr.vmem [resolvable:$true] %s359_s15 }
  0x1a   : > { %s1634_s16 = scalar_lea.vmem %s336_s12, 3072  ;;  %p1642_p5 = scmp.lt.s32.totalorder %s336_s12, %s336_s12 }
  0x1b   : > { %p1954_p11 = pnand %p1483_p9, %p1925_p1  ;;  %p1635_p13 = scmp.ne.s32.totalorder %s336_s12, %s1634_s16 }
  0x1c   : > { %p1643_p7 = scmp.lt.s32.totalorder %s1634_s16, %s1634_s16 }
  0x1d   : > { %p1625_p12 = pneg %p1954_p11 }
  0x1e   : > { %p1644_p10 = por %p1643_p7, %p1642_p5 }
  0x1f   : > { %p1637_p0 = pnand %p1635_p13, %p1625_p12 }
  0x21   : > { %p1638_p3 = pneg %p1637_p0 }
  0x23   : > { %p1645_p9 = pnand %p1644_p10, %p1638_p3 }
  0x25   : > { %1648 = shalt.err (!%p1645_p9)
}
  0x26   : > { %s1821_s23 = smov 192   ;;  %s1822_s24 = smov 12  }
  0x27   : > { %s2194_s1 = sld [smem:[#allocation20_spill]]  ;;  %s1660_s28 = scalar_lea.vmem %s360_s15, 1024 }
  0x28   : > { %p1661_p6 = scmp.ne.s32.totalorder %s360_s15, %s1660_s28  ;;  %p1668_p1 = scmp.lt.s32.totalorder %s360_s15, %s360_s15 }
  0x29   : > { %p1669_p4 = scmp.lt.s32.totalorder %s1660_s28, %s1660_s28 }
  0x2a   : > { %p1663_p13 = pnand %p1661_p6, %p1625_p12 }
  0x2b   : > { %p1670_p5 = por %p1669_p4, %p1668_p1 }
  0x2c   : > { %p1664_p0 = pneg %p1663_p13 }
  0x2d   : > { %1486 = dma.hbm_to_vmem [thread:$0]  (!%p1954_p11), %s2194_s1, 3072, %s336_s12, [#allocation8], %s1821_s23, %s1821_s23, %s1822_s24  }
  0x2e   : > { %p1671_p10 = pnand %p1670_p5, %p1664_p0 }
  0x30   : > { %1674 = shalt.err (!%p1671_p10)
}
  0x31   : > { %s1823_s16 = smov 64   ;;  %s1824_s17 = smov 4  }
  0x32   : > { %s2195_s5 = sld [smem:[#allocation21_spill]]  ;;  %s1825_s12 = smov [#allocation10]  }
  0x33   : > { %s381_s23 = sshll.u32 %s1825_s12, 4  ;;  %s382_s23 = int_to_ptr.vmem [resolvable:$true] %s381_s23 }
  0x34   : > { %s1686_s24 = scalar_lea.vmem %s382_s23, 1024  ;;  %p1694_p4 = scmp.lt.s32.totalorder %s382_s23, %s382_s23 }
  0x35   : > { %p1687_p6 = scmp.ne.s32.totalorder %s382_s23, %s1686_s24  ;;  %p1695_p7 = scmp.lt.s32.totalorder %s1686_s24, %s1686_s24 }
  0x37   : > { %p1689_p3 = pnand %p1687_p6, %p1625_p12  ;;  %p1696_p9 = por %p1695_p7, %p1694_p4 }
  0x38   : > { %1489 = dma.hbm_to_vmem [thread:$0]  (!%p1954_p11), %s2195_s5, 1024, %s360_s15, [#allocation8], %s1823_s16, %s1823_s16, %s1824_s17  }
  0x39   : > { %p1690_p1 = pneg %p1689_p3 }
  0x3b   : > { %p1697_p13 = pnand %p1696_p9, %p1690_p1 }
  0x3d   : > { %1700 = shalt.err (!%p1697_p13)
}
  0x3e   : > { %s2196_s7 = sld [smem:[#allocation22_spill]]  ;;  %s41_s10 = sadd.s32 1, %s1813_s21 }
  0x3f   : > { %p43_p12 = scmp.ge.s32.totalorder %s41_s10, 2  ;;  %s48_s11 = sadd.s32 1, %s1805_s19 }
  0x40   : > { %p55_p0 = scmp.ne.s32.totalorder %s1805_s19, %s1801_s18  ;;  %p56_p5 = scmp.eq.s32.totalorder %s1817_s22, 0 }
  0x41   : > { %s2216_s10 = smov (%p43_p12, %s41_s10), 0 }
  0x42   : > { %2197 = sst [smem:[#allocation19_spill]] %s2216_s10  ;;  %p1991_p10 = por %p56_p5, %p55_p0 }
  0x43   : > { %p1997_p6 = por %p1929_p2, %p55_p0  ;;  %s45_s14 = ssub.s32 %s1813_s21, %s2216_s10 }
  0x44   : > { %1492 = dma.hbm_to_vmem [thread:$0]  (!%p1954_p11), %s2196_s7, 1024, %s382_s23, [#allocation11], %s1823_s16, %s1823_s16, %s1824_s17  }
  0x45   : > { %p1504_p11 = scmp.lt.s32.totalorder %s1817_s22, 2  ;;  %p46_p3 = scmp.eq.s32.totalorder %s45_s14, 0 }
  0x46   : > { %s404_s17 = sand.u32 1, %s1805_s19   ;;  %s1305_s23 = sshll.u32 %s1813_s21, 6 }
  0x47   : > { %s1304_s16 = sshll.u32 %s404_s17, 2  ;;  %s413_s30 = scalar_lea.hbm %s2162_s0, %s1305_s23 }
  0x48   : > { %s2006_s12 = scalar_select %p46_p3, %s1805_s19, %s48_s11  }
  0x49   : > { %s408_s1 = scalar_lea.vmem [#allocation4], %s1304_s16  ;;  %p2014_p2 = pnand %p1504_p11, %p1991_p10 }
  0x4a   : > { %s415_s5 = sshll.u32 %s408_s1, 4  ;;  %s405_s7 = scalar_lea.sflag [#allocation5], %s404_s17  ;;  %s416_s5 = int_to_ptr.vmem [resolvable:$true] %s415_s5 }
  0x4b   : > { %p1703_p1 = pneg %p2014_p2  ;;  %s1714_s14 = scalar_lea.vmem %s416_s5, 64 }
  0x4c   : > { %p1715_p4 = scmp.ne.s32.totalorder %s416_s5, %s1714_s14  ;;  %s1826_s11 = smov [#allocation4]  }
  0x4d   : > { %s1719_s10 = sshll.u32 %s1826_s11, 4  ;;  %s1720_s10 = int_to_ptr.vmem [resolvable:$false] %s1719_s10 }
  0x4e   : > { %p1717_p7 = pnand %p1715_p4, %p1703_p1  ;;  %s1721_s23 = scalar_lea.vmem %s1720_s10, 128 }
  0x4f   : > { %p1722_p13 = scmp.lt.s32.totalorder %s416_s5, %s1720_s10  ;;  %p1723_p12 = scmp.lt.s32.totalorder %s1721_s23, %s1714_s14 }
  0x50   : > { %p1718_p9 = pneg %p1717_p7 }
  0x51   : > { %p1724_p0 = por %p1723_p12, %p1722_p13 }
  0x53   : > { %p1725_p5 = pnand %p1724_p0, %p1718_p9 }
  0x55   : > { %1728 = shalt.err (!%p1725_p5)
}
  0x56   : > { %1496 = dma.hbm_to_vmem [thread:$0]  (!%p2014_p2), %s413_s30, 64, %s416_s5, %s405_s7  }
  0x57   : > { %424 = sbr.rel (%p1945_p8) target bundleno = 2072 (0x818), region = 64  ;;  %s2025_s1 = sand.u32 (!%p1945_p8), 1, %s1801_s18  }
  0x58   : > { %s1307_s13 = sshll.u32 (!%p1945_p8), %s2025_s1, 2  ;;  %s427_s17 = scalar_lea.sflag (!%p1945_p8), [#allocation5], %s2025_s1 }
  0x59   : > { %s2031_s10 = scalar_lea.vmem (!%p1945_p8), [#allocation4], %s1307_s13  ;;  %p2201_p10 = scmp.ne.s32.totalorder (!%p1945_p8), %s2189_s27, 0 }
  0x5c   : > { %1780 = dma.done.wait (%p2201_p10), %s427_s17, 64  }
  0x5d   : > { %1782 = vsyncadd (%p2201_p10), %s427_s17, 4294967232  ;;  %p2202_p11 = scmp.ne.s32.totalorder %s2187_s25, 0 }
  0x5f   : > { %1784 = dma.done.wait (%p2202_p11), [#allocation8], 4096  }
  0x60   : > { %1786 = vsyncadd (%p2202_p11), [#allocation8], 4294963200 }
  0x61   : > { %1788 = dma.done.wait (%p2202_p11), [#allocation11], 1024  }
  0x62   : > { %1790 = vsyncadd (%p2202_p11), [#allocation11], 4294966272  ;;  %v1827_v0 = vmov 0   ;;  %v1567_v1 = vld [vmem:[#allocation7 + $0xac] ss:$12 sps:$4 sm:$0xff]   ;;  %v1828_v18 = vmov 0.0   ;;  %v489_v19 = vlaneseq }
  0x63   : > { %708 = vmatprep.mubr.bf16.mxu0 %v1827_v0  ;;  %v1569_v2 = vld [vmem:[#allocation7 + $0xa8] ss:$12 sps:$4 sm:$0xff]   ;;  %676 = vmatprep.subr.bf16.mxu0 %v1567_v1  ;;  %v1572_v4 = vld [vmem:[#allocation7 + $0x90] ss:$12 sps:$4 sm:$0xff]   ;;  %v1575_v6 = vld [vmem:[#allocation7 + $0x78] ss:$12 sps:$4 sm:$0xff]  }
  0x64   : > { %v1570_v3 = vld [vmem:[#allocation7 + $0x94] ss:$12 sps:$4 sm:$0xff]   ;;  %677 = vmatpush1.bf16.msra.mxu0 %v1569_v2  ;;  %v1573_v5 = vld [vmem:[#allocation7 + $0x7c] ss:$12 sps:$4 sm:$0xff]   ;;  %v1576_v7 = vld [vmem:[#allocation7 + $0x64] ss:$12 sps:$4 sm:$0xff]   ;;  %1395 = vmatprep.subr.bf16.mxu1 %v1828_v18 }
  0x65   : > { %678 = vmatprep.subr.bf16.mxu0 %v1570_v3  ;;  %v1578_v8 = vld [vmem:[#allocation7 + $0x60] ss:$12 sps:$4 sm:$0xff]   ;;  %v1581_v10 = vld [vmem:[#allocation7 + $0x48] ss:$12 sps:$4 sm:$0xff]   ;;  %v1584_v12 = vld [vmem:[#allocation7 + $0x30] ss:$12 sps:$4 sm:$0xff]  }
  0x66   : > { %v1579_v9 = vld [vmem:[#allocation7 + $0x4c] ss:$12 sps:$4 sm:$0xff]   ;;  %v1582_v11 = vld [vmem:[#allocation7 + $0x34] ss:$12 sps:$4 sm:$0xff]   ;;  %v1585_v13 = vld [vmem:[#allocation7 + $0x1c] ss:$12 sps:$4 sm:$0xff]  }
  0x67   : > { %v1587_v14 = vld [vmem:[#allocation7 + $0x18] ss:$12 sps:$4 sm:$0xff]   ;;  %v1590_v16 = vld [vmem:[#allocation7] ss:$12 sps:$4 sm:$0xff]   ;;  %vm1829_vm0 = vmmov 0   ;;  %v534_v20 = vshrl.u32 %v489_v19, 7 }
  0x68   : > { %679 = vmatpush1.bf16.msra.mxu0 %v1572_v4  ;;  %v1588_v15 = vld [vmem:[#allocation7 + $0x4] ss:$12 sps:$4 sm:$0xff]   ;;  %v2046_v17 = vld [vmem:[%s2031_s10] sm:$0xf]  ;;  %1411 = vmatprep.mubr.msk.bf16.mxu1 %vm1829_vm0, %v1828_v18  ;;  %v1593_v36 = vld [vmem:[#allocation7 + $0x80] ss:$12 sps:$4 sm:$0xff]  }
  0x69   : > { %680 = vmatprep.subr.bf16.mxu0 %v1573_v5  ;;  %v539_v21 = vsub.s32 1, %v534_v20  ;;  %v531_v22 = vld [vmem:[%s2164_s2] sm:$0x7]  ;;  %v535_v24 = vsub.s32 0, %v534_v20  ;;  %v1591_v34 = vld [vmem:[#allocation7 + $0xb0] ss:$12 sps:$4 sm:$0xff]   ;;  %v813_v2 = vunpack.c.l.bf16 %v2046_v17 }
  0x6a   : > { %1396 = vmatpush3.bf16.msra.mxu1 %v1591_v34  ;;  %v1592_v35 = vld [vmem:[#allocation7 + $0x98] ss:$12 sps:$4 sm:$0xff]   ;;  %v1594_v37 = vld [vmem:[#allocation7 + $0x68] ss:$12 sps:$4 sm:$0xff]   ;;  %v1595_v38 = vld [vmem:[#allocation7 + $0x50] ss:$12 sps:$4 sm:$0xff]  }
  0x6b   : > { %v540_v23 = vrot.slane %v531_v22, %v539_v21  ;;  %v536_v28 = vrot.slane %v531_v22, %v535_v24  ;;  %1397 = vmatprep.subr.bf16.mxu1 %v1828_v18  ;;  %v1596_v39 = vld [vmem:[#allocation7 + $0x38] ss:$12 sps:$4 sm:$0xff]   ;;  %v1597_v40 = vld [vmem:[#allocation7 + $0x20] ss:$12 sps:$4 sm:$0xff]   ;;  %v1598_v41 = vld [vmem:[#allocation7 + $0x8] ss:$12 sps:$4 sm:$0xff]  }
  0x6c   : > { %681 = vmatpush1.bf16.msra.mxu0 %v1575_v6  ;;  %vm800_vm1 = vcmask 64512   ;;  %v543_v47 = vsub.s32 2, %v534_v20  ;;  %vm817_vm2 = vcmask 1043456   ;;  %v490_v1 = vand.u32 127, %v489_v19  ;;  %v1602_v19 = vld [vmem:[#allocation9 + $0x20] sm:$0xff]   ;;  %v1603_v20 = vld [vmem:[#allocation9 + $0x18] sm:$0xff]  }
  0x6d   : > { %682 = vmatprep.subr.bf16.mxu0 %v1576_v7  ;;  %v1604_v21 = vld [vmem:[#allocation9 + $0x10] sm:$0xff]   ;;  %v1607_v24 = vld [vmem:[#allocation10 + $0x38] sm:$0xff]   ;;  %s2203_s10 = sld [smem:[#allocation23_spill]]  ;;  %s1361_s5 = sshll.u32 %s1809_s20, 6 }
  0x6e   : > { %1398 = vmatpush3.bf16.msra.mxu1 %v1592_v35  ;;  %v544_v48 = vrot.slane %v531_v22, %v543_v47  ;;  %vm491_vm3 = vcmp.lt.s32.totalorder %v490_v1, 32  ;;  %v1605_v22 = vld [vmem:[#allocation9 + $0x8] sm:$0xff]   ;;  %v1338_v34 = vld [vmem:[%s2165_s3] ss:$0 sm:$0xff]  ;;  %s483_s7 = scalar_lea.vmem [#allocation12], %s1307_s13  ;;  %s2204_s16 = sld [smem:[#allocation24_spill]] }
  0x6f   : > { %1399 = vmatprep.subr.bf16.mxu1 %v1828_v18  ;;  %v2082_v4 = vsel %vm491_vm3, 1.0, %v1828_v18  ;;  %s1173_s25 = sshll.u32 %s483_s7, 4  ;;  %s1160_s28 = scalar_lea.sflag [#allocation6], %s2025_s1  ;;  %s1174_s25 = int_to_ptr.vmem [resolvable:$true] %s1173_s25 }
  0x70   : > { %683 = vmatpush1.bf16.msra.mxu0 %v1578_v8  ;;  %s1729_s30 = scalar_lea.vmem %s1174_s25, 64  ;;  %s1830_s26 = smov [#allocation12]  }
  0x71   : > { %684 = vmatprep.subr.bf16.mxu0 %v1579_v9  ;;  %p1730_p8 = scmp.ne.s32.totalorder %s1174_s25, %s1729_s30  ;;  %s1733_s14 = sshll.u32 %s1830_s26, 4  ;;  %s1734_s14 = int_to_ptr.vmem [resolvable:$false] %s1733_s14 }
  0x72   : > { %1400 = vmatpush3.bf16.msra.mxu1 %v1593_v36  ;;  %v1339_v36 = vld [vmem:[%s2166_s4] ss:$0 sm:$0xff]  ;;  %s1735_s20 = scalar_lea.vmem %s1734_s14, 128  ;;  %p1736_p1 = scmp.lt.s32.totalorder %s1174_s25, %s1734_s14 }
  0x73   : > { %1401 = vmatprep.subr.bf16.mxu1 %v1828_v18  ;;  %p1731_p3 = pnand %p1730_p8, %p1997_p6  ;;  %p1737_p4 = scmp.lt.s32.totalorder %s1735_s20, %s1729_s30 }
  0x74   : > { %685 = vmatpush1.bf16.msra.mxu0 %v1581_v10  ;;  %v1599_v10 = vld [vmem:[#allocation9 + $0x38] sm:$0xff]   ;;  %s1171_s24 = scalar_lea.hbm %s2204_s16, %s1361_s5 }
  0x75   : > { %686 = vmatprep.subr.bf16.mxu0 %v1582_v11  ;;  %v1600_v11 = vld [vmem:[#allocation9 + $0x30] sm:$0xff]   ;;  %p1732_p2 = pneg %p1731_p3  ;;  %p1738_p7 = por %p1737_p4, %p1736_p1 }
  0x76   : > { %1402 = vmatpush3.bf16.msra.mxu1 %v1594_v37 }
  0x77   : > { %1403 = vmatprep.subr.bf16.mxu1 %v1828_v18  ;;  %p1739_p9 = pnand %p1738_p7, %p1732_p2 }
  0x78   : > { %687 = vmatpush1.bf16.msra.mxu0 %v1584_v12 }
  0x79   : > { %688 = vmatprep.subr.bf16.mxu0 %v1585_v13 }
  0x7a   : > { %1404 = vmatpush3.bf16.msra.mxu1 %v1595_v38 }
  0x7b   : > { %1405 = vmatprep.subr.bf16.mxu1 %v1828_v18 }
  0x7c   : > { %689 = vmatpush1.bf16.msra.mxu0 %v1587_v14 }
  0x7d   : > { %690 = vmatprep.subr.bf16.mxu0 %v1588_v15 }
  0x7e   : > { %1406 = vmatpush3.bf16.msra.mxu1 %v1596_v39 }
  0x7f   : > { %1407 = vmatprep.subr.bf16.mxu1 %v1828_v18 }
  0x80   : > { %691 = vmatpush1.bf16.msra.mxu0 %v1590_v16 }
  0x81   : > { %1415 = vmatprep.subr.bf16.mxu0 %v1828_v18 }
  0x82   : > { %1408 = vmatpush3.bf16.msra.mxu1 %v1597_v40  ;;  %v1613_v40 = vld [vmem:[#allocation10 + $0x8] sm:$0xff]  }
  0x83   : > { %709 = vmatmul.mubr.bf16.vlgmr.msra.gmra.mxu0 %v2046_v17  ;;  %1409 = vmatprep.subr.bf16.mxu1 %v1828_v18 }
  0x84   : > { %1417 = vmatprep.mubr.msk.bf16.mxu0 %vm1829_vm0, %v1828_v18 }
  0x86   : > { %1410 = vmatpush3.bf16.msra.mxu1 %v1598_v41  ;;  %v1614_v41 = vld [vmem:[#allocation10] sm:$0xff]  }
  0x87   : > { %1421 = vmatprep.subr.bf16.mxu1 %v1828_v18 }
  0x89   : > { %1412 = vmatmul.mubr.bf16.vlgmr.msra.gmra.mxu1 %v2046_v17  ;;  %v1601_v17 = vld [vmem:[#allocation9 + $0x28] sm:$0xff]  }
  0x8a   : > { %1423 = vmatprep.mubr.msk.bf16.mxu1 %vm1829_vm0, %v1828_v18 }
 0x143   : > { %v710_v25 = vpop.f32.mrf.mxu0 }
 0x144   : > { %v711_v32 = vadd.f32 %v710_v25, %v536_v28  ;;  %v1608_v25 = vld [vmem:[#allocation10 + $0x30] sm:$0xff]   ;;  %v1611_v28 = vld [vmem:[#allocation10 + $0x18] sm:$0xff]  }
 0x145   : > { %v712_v26 = vpop.f32.mrf.mxu0 }
 0x146   : > { %v713_v27 = vadd.f32 %v712_v26, %v540_v23  ;;  %v757_v33 = vpack.c.bf16 %v711_v32, %v711_v32  ;;  %v1606_v23 = vld [vmem:[#allocation9] sm:$0xff]   ;;  %v1609_v26 = vld [vmem:[#allocation10 + $0x28] sm:$0xff]  }
 0x147   : > { %v714_v29 = vpop.f32.mrf.mxu0 }
 0x148   : > { %v758_v30 = vpack.c.bf16 %v713_v27, %v713_v27  ;;  %v1610_v27 = vld [vmem:[#allocation10 + $0x20] sm:$0xff]   ;;  %v1612_v29 = vld [vmem:[#allocation10 + $0x10] sm:$0xff]  }
 0x149   : > { %v715_v31 = vpop.f32.mrf.mxu0  ;;  %v751_v49 = vpop.f32.mrf.mxu1 }
 0x14a   : > { %1416 = vmatpush3.bf16.xpose.msra.mxu0 %v758_v30  ;;  %v752_v50 = vadd.f32 %v751_v49, %v544_v48 }
 0x14b   : > { %1427 = vmatprep.subr.bf16.mxu0 %v1828_v18  ;;  %v1413_v51 = vpop.f32.mrf.mxu1 }
 0x14c   : > { %v759_v52 = vpack.c.bf16 %v752_v50, %v752_v50  ;;  %v1357_v50 = vld [vmem:[%s2170_s8] ss:$0 sm:$0xff] }
 0x14d   : > { %v754_v53 = vpop.f32.mrf.mxu1 }
 0x14e   : > { %v819_v54 = vsel %vm817_vm2, %v759_v52, 0 }
 0x14f   : > { %v1414_v55 = vpop.f32.mrf.mxu1  ;;  %1422 = vmatpush3.bf16.msra.mxu1 %v819_v54 }
 0x150   : > { %1447 = vmatprep.subr.bf16.mxu1 %v1828_v18 }
 0x151   : > { %1418 = vmatmul.mubr.bf16.vlgmr.msra.gmra.mxu0 %v757_v33 }
 0x152   : > { %1443 = vmatprep.mubr.msk.bf16.mxu0 %vm1829_vm0, %v1828_v18  ;;  %1428 = vmatpush3.bf16.msra.mxu0 %v1599_v10 }
 0x153   : > { %1429 = vmatprep.subr.bf16.mxu0 %v1828_v18 }
 0x156   : > { %1430 = vmatpush3.bf16.msra.mxu0 %v1600_v11 }
 0x157   : > { %1431 = vmatprep.subr.bf16.mxu0 %v1828_v18 }
 0x15a   : > { %1432 = vmatpush3.bf16.msra.mxu0 %v1601_v17 }
 0x15b   : > { %1433 = vmatprep.subr.bf16.mxu0 %v1828_v18 }
 0x15e   : > { %1434 = vmatpush3.bf16.msra.mxu0 %v1602_v19 }
 0x15f   : > { %1435 = vmatprep.subr.bf16.mxu0 %v1828_v18 }
 0x162   : > { %1436 = vmatpush3.bf16.msra.mxu0 %v1603_v20 }
 0x163   : > { %1437 = vmatprep.subr.bf16.mxu0 %v1828_v18 }
 0x166   : > { %1438 = vmatpush3.bf16.msra.mxu0 %v1604_v21 }
 0x167   : > { %1439 = vmatprep.subr.bf16.mxu0 %v1828_v18 }
 0x16a   : > { %1440 = vmatpush3.bf16.msra.mxu0 %v1605_v22 }
 0x16b   : > { %1441 = vmatprep.subr.bf16.mxu0 %v1828_v18 }
 0x16e   : > { %1442 = vmatpush3.bf16.msra.mxu0 %v1606_v23 }
 0x211   : > { %v794_v42 = vpop.f32.mrf.mxu0 }
 0x212   : > { %v801_v43 = vsel %vm800_vm1, %v794_v42, -inf }
 0x213   : > { %802 = vmax.xlane.f32.xlu0 %v801_v43  ;;  %v1419_v44 = vpop.f32.mrf.mxu0 }
 0x215   : > { %v797_v45 = vpop.f32.mrf.mxu0 }
 0x217   : > { %v1420_v46 = vpop.f32.mrf.mxu0 }
 0x29c   : > { %v803_v56 = vpop.xlane.xlu0 %802 }
 0x29d   : > { %v804_v57 = vsub.f32 %v794_v42, %v803_v56  ;;  %v1340_v42 = vld [vmem:[%s2168_s6] ss:$0 sm:$0xff] }
 0x29f   : > { %v805_v58 = vmul.f32 1.442695, %v804_v57 }
 0x2a1   : > { %1615 = vpow2.f32 %v805_v58 }
 0x2ae   : > { %v1616_v59 = vpop.eup %1615 }
 0x2af   : > { %v807_v60 = vsel %vm800_vm1, %v1616_v59, 0.0 }
 0x2b0   : > { %808 = vadd.xlane.f32.xlu0 %v807_v60 }
 0x339   : > { %v809_v61 = vpop.xlane.xlu0 %808 }
 0x33a   : > { %1617 = vrcp.f32 %v809_v61 }
 0x347   : > { %v1618_v62 = vpop.eup %1617 }
 0x348   : > { %v811_v63 = vmul.f32 %v1618_v62, %v1616_v59 }
 0x34a   : > { %v812_v0 = vpack.c.bf16 %v811_v63, %v811_v63 }
 0x34c   : > { %1424 = vmatmul.mubr.msk.bf16.vlgmr.msra.gmra.mxu1 %vm800_vm1, %v812_v0 }
 0x34d   : > { %1463 = vmatprep.mubr.msk.bf16.mxu1 %vm1829_vm0, %v1828_v18  ;;  %1448 = vmatpush3.bf16.msra.mxu1 %v1607_v24 }
 0x34e   : > { %1449 = vmatprep.subr.bf16.mxu1 %v1828_v18 }
 0x351   : > { %1450 = vmatpush3.bf16.msra.mxu1 %v1608_v25 }
 0x352   : > { %1451 = vmatprep.subr.bf16.mxu1 %v1828_v18 }
 0x355   : > { %1452 = vmatpush3.bf16.msra.mxu1 %v1609_v26 }
 0x356   : > { %1453 = vmatprep.subr.bf16.mxu1 %v1828_v18 }
 0x359   : > { %1454 = vmatpush3.bf16.msra.mxu1 %v1610_v27 }
 0x35a   : > { %1455 = vmatprep.subr.bf16.mxu1 %v1828_v18 }
 0x35d   : > { %1456 = vmatpush3.bf16.msra.mxu1 %v1611_v28 }
 0x35e   : > { %1457 = vmatprep.subr.bf16.mxu1 %v1828_v18 }
 0x361   : > { %1458 = vmatpush3.bf16.msra.mxu1 %v1612_v29 }
 0x362   : > { %1459 = vmatprep.subr.bf16.mxu1 %v1828_v18 }
 0x365   : > { %1460 = vmatpush3.bf16.msra.mxu1 %v1613_v40 }
 0x366   : > { %1461 = vmatprep.subr.bf16.mxu1 %v1828_v18 }
 0x369   : > { %1462 = vmatpush3.bf16.msra.mxu1 %v1614_v41 }
 0x40c   : > { %v855_v3 = vpop.f32.mrf.mxu1 }
 0x40d   : > { %v856_v5 = vadd.f32 %v855_v3, %v813_v2  ;;  %v1358_v2 = vld [vmem:[%s2171_s9] ss:$0 sm:$0xff] }
 0x40e   : > { %v1425_v6 = vpop.f32.mrf.mxu1 }
 0x40f   : > { %v863_v7 = vmul.f32 %v2082_v4, %v856_v5  ;;  %v1359_v5 = vld [vmem:[%s2203_s10] ss:$0 sm:$0xff] }
 0x410   : > { %v858_v8 = vpop.f32.mrf.mxu1 }
 0x411   : > { %864 = vadd.xlane.f32.xlu1 %v863_v7 }
 0x412   : > { %v1426_v9 = vpop.f32.mrf.mxu1 }
 0x49a   : > { %v865_v12 = vpop.xlane.xlu1 %864 }
 0x49b   : > { %v866_v13 = vmul.f32 0.03125, %v865_v12 }
 0x49d   : > { %v867_v14 = vsub.f32 %v863_v7, %v866_v13 }
 0x49f   : > { %v868_v15 = vmul.f32 %v2082_v4, %v867_v14 }
 0x4a1   : > { %v869_v16 = vmul.f32 %v868_v15, %v868_v15 }
 0x4a3   : > { %870 = vadd.xlane.f32.xlu1 %v869_v16 }
 0x52c   : > { %v871_v30 = vpop.xlane.xlu1 %870 }
 0x52d   : > { %v872_v31 = vmul.f32 0.03125, %v871_v30 }
 0x52f   : > { %v873_v32 = vadd.f32 1e-05, %v872_v31 }
 0x531   : > { %1619 = vrsqrt.f32 %v873_v32 }
 0x53e   : > { %v1620_v33 = vpop.eup %1619 }
 0x53f   : > { %v875_v35 = vmul.f32 %v1620_v33, %v868_v15 }
 0x541   : > { %v882_v37 = vmul.f32 %v1338_v34, %v875_v35 }
 0x543   : > { %v889_v38 = vadd.f32 %v1339_v36, %v882_v37 }
 0x545   : > { %v893_v39 = vpack.c.bf16 %v889_v38, %v889_v38 }
 0x547   : > { %1444 = vmatmul.mubr.bf16.vlgmr.msra.gmra.mxu0 %v893_v39 }
 0x607   : > { %v999_v43 = vpop.f32.mrf.mxu0 }
 0x608   : > { %v1000_v44 = vadd.f32 %v1340_v42, %v999_v43 }
 0x609   : > { %v1445_v45 = vpop.f32.mrf.mxu0 }
 0x60a   : > { %v1005_v46 = vmax.f32 %v1000_v44, 0.0 }
 0x60b   : > { %v1002_v47 = vpop.f32.mrf.mxu0 }
 0x60c   : > { %v1007_v48 = vpack.c.bf16 %v1005_v46, %v1005_v46 }
 0x60d   : > { %v1446_v49 = vpop.f32.mrf.mxu0 }
 0x60e   : > { %1464 = vmatmul.mubr.bf16.vlgmr.msra.gmra.mxu1 %v1007_v48 }
 0x6ce   : > { %v1106_v51 = vpop.f32.mrf.mxu1 }
 0x6cf   : > { %v1125_v18 = vadd.f32 %v1357_v50, %v1106_v51 }
 0x6d0   : > { %v1465_v52 = vpop.f32.mrf.mxu1 }
 0x6d1   : > { %v1127_v53 = vadd.f32 %v1125_v18, %v889_v38 }
 0x6d2   : > { %v1109_v54 = vpop.f32.mrf.mxu1 }
 0x6d3   : > { %v1130_v55 = vmul.f32 %v2082_v4, %v1127_v53 }
 0x6d4   : > { %v1466_v56 = vpop.f32.mrf.mxu1 }
 0x6d5   : > { %1131 = vadd.xlane.f32.xlu0 %v1130_v55 }
 0x75e   : > { %v1132_v57 = vpop.xlane.xlu0 %1131 }
 0x75f   : > { %v1133_v58 = vmul.f32 0.03125, %v1132_v57 }
 0x761   : > { %v1134_v59 = vsub.f32 %v1130_v55, %v1133_v58 }
 0x763   : > { %v1135_v60 = vmul.f32 %v2082_v4, %v1134_v59 }
 0x765   : > { %v1136_v61 = vmul.f32 %v1135_v60, %v1135_v60 }
 0x767   : > { %1137 = vadd.xlane.f32.xlu1 %v1136_v61 }
 0x7f0   : > { %v1138_v62 = vpop.xlane.xlu1 %1137 }
 0x7f1   : > { %v1139_v63 = vmul.f32 0.03125, %v1138_v62 }
 0x7f3   : > { %v1140_v0 = vadd.f32 1e-05, %v1139_v63 }
 0x7f5   : > { %1621 = vrsqrt.f32 %v1140_v0 }
 0x802   : > { %v1622_v1 = vpop.eup %1621 }
 0x803   : > { %v1142_v3 = vmul.f32 %v1622_v1, %v1135_v60 }
 0x805   : > { %v1149_v6 = vmul.f32 %v1358_v2, %v1142_v3 }
 0x807   : > { %v1156_v4 = vadd.f32 %v1359_v5, %v1149_v6 }
 0x809   : > { %v1157_v7 = vpack.c.bf16 %v1156_v4, %v1156_v4 }
 0x80b   : > { %1158 = vst [vmem:[%s483_s7] sm:$0xf] %v1157_v7 }
 0x80c   : > { %1742 = shalt.err (!%p1739_p9)
}
 0x80d   : > { %s1743_s13 = scalar_lea.hbm %s1171_s24, 64  ;;  %s1747_s23 = scalar_lea.hbm %s2204_s16, 128 }
 0x80e   : > { %p1744_p13 = scmp.ne.s32.totalorder %s1171_s24, %s1743_s13  ;;  %p1748_p5 = scmp.lt.s32.totalorder %s1171_s24, %s2204_s16 }
 0x80f   : > { %p1749_p10 = scmp.lt.s32.totalorder %s1747_s23, %s1743_s13 }
 0x810   : > { %p1745_p12 = pnand %p1744_p13, %p1997_p6 }
 0x811   : > { %p1750_p11 = por %p1749_p10, %p1748_p5 }
 0x812   : > { %p1746_p0 = pneg %p1745_p12 }
 0x814   : > { %p1751_p8 = pnand %p1750_p11, %p1746_p0 }
 0x816   : > { %1754 = shalt.err (!%p1751_p8)
}
 0x817   : > { %1481 = dma.vmem_to_hbm [thread:$0]  (%p1997_p6), %s1174_s25, 64, %s1171_s24, %s1160_s28  }
 0x818 PF: > { %s2205_s5 = sld [smem:[#allocation17_spill]]  ;;  %p2208_p2 = scmp.ge.s32.totalorder %s1817_s22, 2 }
 0x819   : > { %s2206_s7 = sld [smem:[#allocation18_spill]] }
 0x81e   : > { %s1185_s27 = sand.u32 1, %s2205_s5  }
 0x81f   : > { %p2207_p3 = scmp.ne.s32.totalorder %s2206_s7, 0  ;;  %s1186_s29 = scalar_lea.sflag [#allocation6], %s1185_s27 }
 0x821   : > { %p1498_p1 = pnand %p2208_p2, %p2207_p3 }
 0x823   : > { %p1499_p4 = pneg %p1498_p1 }
 0x825   : > { %1792 = dma.done.wait (%p1499_p4), %s1186_s29, 64  }
 0x826   : > { %1794 = vsyncadd (%p1499_p4), %s1186_s29, 4294967232  ;;  %s29_s22 = sadd.s32 1, %s1817_s22   ;;  %s2209_s15 = sld [smem:[#allocation19_spill]] }
 0x827   : > { %p26_p7 = scmp.ge.s32.totalorder %s29_s22, 4   ;;  %s2210_s17 = smov %s1801_s18 }
 0x828   : > { %s2211_s18 = smov %s1805_s19  ;;  %s2212_s19 = smov %s2006_s12 }
 0x829   : > { %s2213_s20 = smov %s1813_s21  ;;  %28 = sbr.rel (!%p26_p7) target bundleno = 14 (0xe), region = 134 }
 0x82c   : > { %s2214_s21 = smov %s2209_s15 }
 0x82e   :  { %1191 = vsyncpa [#allocation5], 1 }
 0x82f   :  { %1193 = vsyncpa [#allocation5 + $0x1], 1 }
 0x830   :  { %1194 = vsyncpa [#allocation8], 1 }
 0x831   :  { %1195 = vsyncpa [#allocation11], 1 }
 0x832   :  { %1196 = vsyncpa [#allocation6], 1 }
 0x833   :  { %1198 = vsyncpa [#allocation6 + $0x1], 1 }

// kernel: tpu_custom_call.1
= control target key start
LH: loop header
LB: loop body
LE: loop exit
PB: predicated region body
PF: predicated region fallthrough
CT: control target
= control target key end

     0   :  { %s2162_s0 = inlined_call_operand.hbm [shape: bf16[2,8,128], index: 0, kind: input, shape index: {}]   ;;  %s2163_s1 = inlined_call_operand.hbm [shape: bf16[128,384], index: 1, kind: input, shape index: {}]   ;;  %s2164_s2 = inlined_call_operand.vmem [shape: f32[1,384], index: 2, kind: input, shape index: {}]   ;;  %s2165_s3 = inlined_call_operand.vmem [shape: f32[1,128], index: 3, kind: input, shape index: {}]   ;;  %s2166_s4 = inlined_call_operand.vmem [shape: f32[1,128], index: 4, kind: input, shape index: {}]   ;;  %s2167_s5 = inlined_call_operand.hbm [shape: bf16[128,128], index: 5, kind: input, shape index: {}]   ;;  %s2168_s6 = inlined_call_operand.vmem [shape: f32[1,128], index: 6, kind: input, shape index: {}]   ;;  %s2169_s7 = inlined_call_operand.hbm [shape: bf16[128,128], index: 7, kind: input, shape index: {}]   ;;  %s2170_s8 = inlined_call_operand.vmem [shape: f32[1,128], index: 8, kind: input, shape index: {}]   ;;  %s2171_s9 = inlined_call_operand.vmem [shape: f32[1,128], index: 9, kind: input, shape index: {}]   ;;  %s2172_s10 = inlined_call_operand.vmem [shape: f32[1,128], index: 10, kind: input, shape index: {}]   ;;  %s2173_s11 = inlined_call_operand.hbm [shape: bf16[2,8,128], index: 11, kind: output, shape index: {}]  }
   0x1   :  { %2181 = sst [smem:[#allocation20_spill]] %s2163_s1 }
   0x2   :  { %2182 = sst [smem:[#allocation21_spill]] %s2167_s5 }
   0x3   :  { %2183 = sst [smem:[#allocation22_spill]] %s2169_s7 }
   0x4   :  { %2184 = sst [smem:[#allocation23_spill]] %s2172_s10 }
   0x5   :  { %2185 = sst [smem:[#allocation24_spill]] %s2173_s11 }
   0x6   :  { %16 = vsyncpa [#allocation5], 0 }
   0x7   :  { %18 = vsyncpa [#allocation5 + $0x1], 0 }
   0x8   :  { %19 = vsyncpa [#allocation8], 0 }
   0x9   :  { %20 = vsyncpa [#allocation11], 0 }
   0xa   :  { %21 = vsyncpa [#allocation6], 0 }
   0xb   :  { %23 = vsyncpa [#allocation6 + $0x1], 0  ;;  %s1891_s17 = smov 0   ;;  %s1893_s18 = smov 0  }
   0xc   :  { %s1895_s19 = smov 0   ;;  %s1897_s20 = smov 0  }
   0xd   :  { %s1899_s21 = smov 0   ;;  %s1901_s22 = smov 0  }
   0xe LB: > { %2186 = sst [smem:[#allocation17_spill]] %s1797_s17  ;;  %s1296_s23 = sadd.s32 4294967295, %s1817_s22   ;;  %s1817_s22 = sphi %s1901_s22, %s29_s22   ;;  %s1813_s21 = sphi %s1899_s21, %s2214_s21   ;;  %s1809_s20 = sphi %s1897_s20, %s2213_s20   ;;  %s1805_s19 = sphi %s1895_s19, %s2212_s19   ;;  %s1801_s18 = sphi %s1893_s18, %s2211_s18   ;;  %s1797_s17 = sphi %s1891_s17, %s2210_s17  }
   0xf   : > { %s1297_s24 = sadd.s32 4294967294, %s1817_s22   ;;  %p61_p0 = scmp.ne.s32.totalorder %s1801_s18, %s1797_s17 }
  0x10   : > { %p1925_p1 = scmp.eq.s32.totalorder %s1296_s23, 0  ;;  %p1929_p2 = scmp.eq.s32.totalorder %s1296_s23, 1 }
  0x11   : > { %p316_p3 = scmp.eq.s32.totalorder %s1297_s24, 1  ;;  %p1298_p5 = scmp.ge.s32.totalorder %s1817_s22, 1 }
  0x12   : > { %s2187_s25 = scalar_select %p1925_p1, 1, 0 }
  0x13   : > { %p1935_p4 = por %p1925_p1, %p61_p0  ;;  %p1940_p6 = por %p316_p3, %p61_p0 }
  0x14   : > { %p323_p7 = scmp.lt.s32.totalorder %s1817_s22, 3  ;;  %s1819_s30 = smov [#allocation7]  }
  0x15   : > { %s2189_s27 = scalar_select %p1935_p4, 1, 0 }
  0x16   : > { %s2190_s28 = scalar_select %p1940_p6, 1, 0 }
  0x17   : > { %p1945_p8 = pnand %p1298_p5, %p323_p7  ;;  %s335_s12 = sshll.u32 %s1819_s30, 4  ;;  %s336_s12 = int_to_ptr.vmem [resolvable:$true] %s335_s12 }
  0x18   : > { %2191 = sst [smem:[#allocation18_spill]] %s2190_s28  ;;  %s1820_s14 = smov [#allocation9]  }
  0x19   : > { %p1483_p9 = pneg %p1945_p8  ;;  %s359_s15 = sshll.u32 %s1820_s14, 4  ;;  %s360_s15 = int_to_ptr.vmem [resolvable:$true] %s359_s15 }
  0x1a   : > { %s1634_s16 = scalar_lea.vmem %s336_s12, 3072  ;;  %p1642_p5 = scmp.lt.s32.totalorder %s336_s12, %s336_s12 }
  0x1b   : > { %p1954_p11 = pnand %p1483_p9, %p1925_p1  ;;  %p1635_p13 = scmp.ne.s32.totalorder %s336_s12, %s1634_s16 }
  0x1c   : > { %p1643_p7 = scmp.lt.s32.totalorder %s1634_s16, %s1634_s16 }
  0x1d   : > { %p1625_p12 = pneg %p1954_p11 }
  0x1e   : > { %p1644_p10 = por %p1643_p7, %p1642_p5 }
  0x1f   : > { %p1637_p0 = pnand %p1635_p13, %p1625_p12 }
  0x21   : > { %p1638_p3 = pneg %p1637_p0 }
  0x23   : > { %p1645_p9 = pnand %p1644_p10, %p1638_p3 }
  0x25   : > { %1648 = shalt.err (!%p1645_p9)
}
  0x26   : > { %s1821_s23 = smov 192   ;;  %s1822_s24 = smov 12  }
  0x27   : > { %s2194_s1 = sld [smem:[#allocation20_spill]]  ;;  %s1660_s28 = scalar_lea.vmem %s360_s15, 1024 }
  0x28   : > { %p1661_p6 = scmp.ne.s32.totalorder %s360_s15, %s1660_s28  ;;  %p1668_p1 = scmp.lt.s32.totalorder %s360_s15, %s360_s15 }
  0x29   : > { %p1669_p4 = scmp.lt.s32.totalorder %s1660_s28, %s1660_s28 }
  0x2a   : > { %p1663_p13 = pnand %p1661_p6, %p1625_p12 }
  0x2b   : > { %p1670_p5 = por %p1669_p4, %p1668_p1 }
  0x2c   : > { %p1664_p0 = pneg %p1663_p13 }
  0x2d   : > { %1486 = dma.hbm_to_vmem [thread:$0]  (!%p1954_p11), %s2194_s1, 3072, %s336_s12, [#allocation8], %s1821_s23, %s1821_s23, %s1822_s24  }
  0x2e   : > { %p1671_p10 = pnand %p1670_p5, %p1664_p0 }
  0x30   : > { %1674 = shalt.err (!%p1671_p10)
}
  0x31   : > { %s1823_s16 = smov 64   ;;  %s1824_s17 = smov 4  }
  0x32   : > { %s2195_s5 = sld [smem:[#allocation21_spill]]  ;;  %s1825_s12 = smov [#allocation10]  }
  0x33   : > { %s381_s23 = sshll.u32 %s1825_s12, 4  ;;  %s382_s23 = int_to_ptr.vmem [resolvable:$true] %s381_s23 }
  0x34   : > { %s1686_s24 = scalar_lea.vmem %s382_s23, 1024  ;;  %p1694_p4 = scmp.lt.s32.totalorder %s382_s23, %s382_s23 }
  0x35   : > { %p1687_p6 = scmp.ne.s32.totalorder %s382_s23, %s1686_s24  ;;  %p1695_p7 = scmp.lt.s32.totalorder %s1686_s24, %s1686_s24 }
  0x37   : > { %p1689_p3 = pnand %p1687_p6, %p1625_p12  ;;  %p1696_p9 = por %p1695_p7, %p1694_p4 }
  0x38   : > { %1489 = dma.hbm_to_vmem [thread:$0]  (!%p1954_p11), %s2195_s5, 1024, %s360_s15, [#allocation8], %s1823_s16, %s1823_s16, %s1824_s17  }
  0x39   : > { %p1690_p1 = pneg %p1689_p3 }
  0x3b   : > { %p1697_p13 = pnand %p1696_p9, %p1690_p1 }
  0x3d   : > { %1700 = shalt.err (!%p1697_p13)
}
  0x3e   : > { %s2196_s7 = sld [smem:[#allocation22_spill]]  ;;  %s41_s10 = sadd.s32 1, %s1813_s21 }
  0x3f   : > { %p43_p12 = scmp.ge.s32.totalorder %s41_s10, 2  ;;  %s48_s11 = sadd.s32 1, %s1805_s19 }
  0x40   : > { %p55_p0 = scmp.ne.s32.totalorder %s1805_s19, %s1801_s18  ;;  %p56_p5 = scmp.eq.s32.totalorder %s1817_s22, 0 }
  0x41   : > { %s2216_s10 = smov (%p43_p12, %s41_s10), 0 }
  0x42   : > { %2197 = sst [smem:[#allocation19_spill]] %s2216_s10  ;;  %p1991_p10 = por %p56_p5, %p55_p0 }
  0x43   : > { %p1997_p6 = por %p1929_p2, %p55_p0  ;;  %s45_s14 = ssub.s32 %s1813_s21, %s2216_s10 }
  0x44   : > { %1492 = dma.hbm_to_vmem [thread:$0]  (!%p1954_p11), %s2196_s7, 1024, %s382_s23, [#allocation11], %s1823_s16, %s1823_s16, %s1824_s17  }
  0x45   : > { %p1504_p11 = scmp.lt.s32.totalorder %s1817_s22, 2  ;;  %p46_p3 = scmp.eq.s32.totalorder %s45_s14, 0 }
  0x46   : > { %s404_s17 = sand.u32 1, %s1805_s19   ;;  %s1305_s23 = sshll.u32 %s1813_s21, 6 }
  0x47   : > { %s1304_s16 = sshll.u32 %s404_s17, 2  ;;  %s413_s30 = scalar_lea.hbm %s2162_s0, %s1305_s23 }
  0x48   : > { %s2006_s12 = scalar_select %p46_p3, %s1805_s19, %s48_s11  }
  0x49   : > { %s408_s1 = scalar_lea.vmem [#allocation4], %s1304_s16  ;;  %p2014_p2 = pnand %p1504_p11, %p1991_p10 }
  0x4a   : > { %s415_s5 = sshll.u32 %s408_s1, 4  ;;  %s405_s7 = scalar_lea.sflag [#allocation5], %s404_s17  ;;  %s416_s5 = int_to_ptr.vmem [resolvable:$true] %s415_s5 }
  0x4b   : > { %p1703_p1 = pneg %p2014_p2  ;;  %s1714_s14 = scalar_lea.vmem %s416_s5, 64 }
  0x4c   : > { %p1715_p4 = scmp.ne.s32.totalorder %s416_s5, %s1714_s14  ;;  %s1826_s11 = smov [#allocation4]  }
  0x4d   : > { %s1719_s10 = sshll.u32 %s1826_s11, 4  ;;  %s1720_s10 = int_to_ptr.vmem [resolvable:$false] %s1719_s10 }
  0x4e   : > { %p1717_p7 = pnand %p1715_p4, %p1703_p1  ;;  %s1721_s23 = scalar_lea.vmem %s1720_s10, 128 }
  0x4f   : > { %p1722_p13 = scmp.lt.s32.totalorder %s416_s5, %s1720_s10  ;;  %p1723_p12 = scmp.lt.s32.totalorder %s1721_s23, %s1714_s14 }
  0x50   : > { %p1718_p9 = pneg %p1717_p7 }
  0x51   : > { %p1724_p0 = por %p1723_p12, %p1722_p13 }
  0x53   : > { %p1725_p5 = pnand %p1724_p0, %p1718_p9 }
  0x55   : > { %1728 = shalt.err (!%p1725_p5)
}
  0x56   : > { %1496 = dma.hbm_to_vmem [thread:$0]  (!%p2014_p2), %s413_s30, 64, %s416_s5, %s405_s7  }
  0x57   : > { %424 = sbr.rel (%p1945_p8) target bundleno = 2072 (0x818), region = 64  ;;  %s2025_s1 = sand.u32 (!%p1945_p8), 1, %s1801_s18  }
  0x58   : > { %s1307_s13 = sshll.u32 (!%p1945_p8), %s2025_s1, 2  ;;  %s427_s17 = scalar_lea.sflag (!%p1945_p8), [#allocation5], %s2025_s1 }
  0x59   : > { %s2031_s10 = scalar_lea.vmem (!%p1945_p8), [#allocation4], %s1307_s13  ;;  %p2201_p10 = scmp.ne.s32.totalorder (!%p1945_p8), %s2189_s27, 0 }
  0x5c   : > { %1780 = dma.done.wait (%p2201_p10), %s427_s17, 64  }
  0x5d   : > { %1782 = vsyncadd (%p2201_p10), %s427_s17, 4294967232  ;;  %p2202_p11 = scmp.ne.s32.totalorder %s2187_s25, 0 }
  0x5f   : > { %1784 = dma.done.wait (%p2202_p11), [#allocation8], 4096  }
  0x60   : > { %1786 = vsyncadd (%p2202_p11), [#allocation8], 4294963200 }
  0x61   : > { %1788 = dma.done.wait (%p2202_p11), [#allocation11], 1024  }
  0x62   : > { %1790 = vsyncadd (%p2202_p11), [#allocation11], 4294966272  ;;  %v1827_v0 = vmov 0   ;;  %v1567_v1 = vld [vmem:[#allocation7 + $0xac] ss:$12 sps:$4 sm:$0xff]   ;;  %v1828_v18 = vmov 0.0   ;;  %v489_v19 = vlaneseq }
  0x63   : > { %708 = vmatprep.mubr.bf16.mxu0 %v1827_v0  ;;  %v1569_v2 = vld [vmem:[#allocation7 + $0xa8] ss:$12 sps:$4 sm:$0xff]   ;;  %676 = vmatprep.subr.bf16.mxu0 %v1567_v1  ;;  %v1572_v4 = vld [vmem:[#allocation7 + $0x90] ss:$12 sps:$4 sm:$0xff]   ;;  %v1575_v6 = vld [vmem:[#allocation7 + $0x78] ss:$12 sps:$4 sm:$0xff]  }
  0x64   : > { %v1570_v3 = vld [vmem:[#allocation7 + $0x94] ss:$12 sps:$4 sm:$0xff]   ;;  %677 = vmatpush1.bf16.msra.mxu0 %v1569_v2  ;;  %v1573_v5 = vld [vmem:[#allocation7 + $0x7c] ss:$12 sps:$4 sm:$0xff]   ;;  %v1576_v7 = vld [vmem:[#allocation7 + $0x64] ss:$12 sps:$4 sm:$0xff]   ;;  %1395 = vmatprep.subr.bf16.mxu1 %v1828_v18 }
  0x65   : > { %678 = vmatprep.subr.bf16.mxu0 %v1570_v3  ;;  %v1578_v8 = vld [vmem:[#allocation7 + $0x60] ss:$12 sps:$4 sm:$0xff]   ;;  %v1581_v10 = vld [vmem:[#allocation7 + $0x48] ss:$12 sps:$4 sm:$0xff]   ;;  %v1584_v12 = vld [vmem:[#allocation7 + $0x30] ss:$12 sps:$4 sm:$0xff]  }
  0x66   : > { %v1579_v9 = vld [vmem:[#allocation7 + $0x4c] ss:$12 sps:$4 sm:$0xff]   ;;  %v1582_v11 = vld [vmem:[#allocation7 + $0x34] ss:$12 sps:$4 sm:$0xff]   ;;  %v1585_v13 = vld [vmem:[#allocation7 + $0x1c] ss:$12 sps:$4 sm:$0xff]  }
  0x67   : > { %v1587_v14 = vld [vmem:[#allocation7 + $0x18] ss:$12 sps:$4 sm:$0xff]   ;;  %v1590_v16 = vld [vmem:[#allocation7] ss:$12 sps:$4 sm:$0xff]   ;;  %vm1829_vm0 = vmmov 0   ;;  %v534_v20 = vshrl.u32 %v489_v19, 7 }
  0x68   : > { %679 = vmatpush1.bf16.msra.mxu0 %v1572_v4  ;;  %v1588_v15 = vld [vmem:[#allocation7 + $0x4] ss:$12 sps:$4 sm:$0xff]   ;;  %v2046_v17 = vld [vmem:[%s2031_s10] sm:$0xf]  ;;  %1411 = vmatprep.mubr.msk.bf16.mxu1 %vm1829_vm0, %v1828_v18  ;;  %v1593_v36 = vld [vmem:[#allocation7 + $0x80] ss:$12 sps:$4 sm:$0xff]  }
  0x69   : > { %680 = vmatprep.subr.bf16.mxu0 %v1573_v5  ;;  %v539_v21 = vsub.s32 1, %v534_v20  ;;  %v531_v22 = vld [vmem:[%s2164_s2] sm:$0x7]  ;;  %v535_v24 = vsub.s32 0, %v534_v20  ;;  %v1591_v34 = vld [vmem:[#allocation7 + $0xb0] ss:$12 sps:$4 sm:$0xff]   ;;  %v813_v2 = vunpack.c.l.bf16 %v2046_v17 }
  0x6a   : > { %1396 = vmatpush3.bf16.msra.mxu1 %v1591_v34  ;;  %v1592_v35 = vld [vmem:[#allocation7 + $0x98] ss:$12 sps:$4 sm:$0xff]   ;;  %v1594_v37 = vld [vmem:[#allocation7 + $0x68] ss:$12 sps:$4 sm:$0xff]   ;;  %v1595_v38 = vld [vmem:[#allocation7 + $0x50] ss:$12 sps:$4 sm:$0xff]  }
  0x6b   : > { %v540_v23 = vrot.slane %v531_v22, %v539_v21  ;;  %v536_v28 = vrot.slane %v531_v22, %v535_v24  ;;  %1397 = vmatprep.subr.bf16.mxu1 %v1828_v18  ;;  %v1596_v39 = vld [vmem:[#allocation7 + $0x38] ss:$12 sps:$4 sm:$0xff]   ;;  %v1597_v40 = vld [vmem:[#allocation7 + $0x20] ss:$12 sps:$4 sm:$0xff]   ;;  %v1598_v41 = vld [vmem:[#allocation7 + $0x8] ss:$12 sps:$4 sm:$0xff]  }
  0x6c   : > { %681 = vmatpush1.bf16.msra.mxu0 %v1575_v6  ;;  %vm800_vm1 = vcmask 64512   ;;  %v543_v47 = vsub.s32 2, %v534_v20  ;;  %vm817_vm2 = vcmask 1043456   ;;  %v490_v1 = vand.u32 127, %v489_v19  ;;  %v1602_v19 = vld [vmem:[#allocation9 + $0x20] sm:$0xff]   ;;  %v1603_v20 = vld [vmem:[#allocation9 + $0x18] sm:$0xff]  }
  0x6d   : > { %682 = vmatprep.subr.bf16.mxu0 %v1576_v7  ;;  %v1604_v21 = vld [vmem:[#allocation9 + $0x10] sm:$0xff]   ;;  %v1607_v24 = vld [vmem:[#allocation10 + $0x38] sm:$0xff]   ;;  %s2203_s10 = sld [smem:[#allocation23_spill]]  ;;  %s1361_s5 = sshll.u32 %s1809_s20, 6 }
  0x6e   : > { %1398 = vmatpush3.bf16.msra.mxu1 %v1592_v35  ;;  %v544_v48 = vrot.slane %v531_v22, %v543_v47  ;;  %vm491_vm3 = vcmp.lt.s32.totalorder %v490_v1, 32  ;;  %v1605_v22 = vld [vmem:[#allocation9 + $0x8] sm:$0xff]   ;;  %v1338_v34 = vld [vmem:[%s2165_s3] ss:$0 sm:$0xff]  ;;  %s483_s7 = scalar_lea.vmem [#allocation12], %s1307_s13  ;;  %s2204_s16 = sld [smem:[#allocation24_spill]] }
  0x6f   : > { %1399 = vmatprep.subr.bf16.mxu1 %v1828_v18  ;;  %v2082_v4 = vsel %vm491_vm3, 1.0, %v1828_v18  ;;  %s1173_s25 = sshll.u32 %s483_s7, 4  ;;  %s1160_s28 = scalar_lea.sflag [#allocation6], %s2025_s1  ;;  %s1174_s25 = int_to_ptr.vmem [resolvable:$true] %s1173_s25 }
  0x70   : > { %683 = vmatpush1.bf16.msra.mxu0 %v1578_v8  ;;  %s1729_s30 = scalar_lea.vmem %s1174_s25, 64  ;;  %s1830_s26 = smov [#allocation12]  }
  0x71   : > { %684 = vmatprep.subr.bf16.mxu0 %v1579_v9  ;;  %p1730_p8 = scmp.ne.s32.totalorder %s1174_s25, %s1729_s30  ;;  %s1733_s14 = sshll.u32 %s1830_s26, 4  ;;  %s1734_s14 = int_to_ptr.vmem [resolvable:$false] %s1733_s14 }
  0x72   : > { %1400 = vmatpush3.bf16.msra.mxu1 %v1593_v36  ;;  %v1339_v36 = vld [vmem:[%s2166_s4] ss:$0 sm:$0xff]  ;;  %s1735_s20 = scalar_lea.vmem %s1734_s14, 128  ;;  %p1736_p1 = scmp.lt.s32.totalorder %s1174_s25, %s1734_s14 }
  0x73   : > { %1401 = vmatprep.subr.bf16.mxu1 %v1828_v18  ;;  %p1731_p3 = pnand %p1730_p8, %p1997_p6  ;;  %p1737_p4 = scmp.lt.s32.totalorder %s1735_s20, %s1729_s30 }
  0x74   : > { %685 = vmatpush1.bf16.msra.mxu0 %v1581_v10  ;;  %v1599_v10 = vld [vmem:[#allocation9 + $0x38] sm:$0xff]   ;;  %s1171_s24 = scalar_lea.hbm %s2204_s16, %s1361_s5 }
  0x75   : > { %686 = vmatprep.subr.bf16.mxu0 %v1582_v11  ;;  %v1600_v11 = vld [vmem:[#allocation9 + $0x30] sm:$0xff]   ;;  %p1732_p2 = pneg %p1731_p3  ;;  %p1738_p7 = por %p1737_p4, %p1736_p1 }
  0x76   : > { %1402 = vmatpush3.bf16.msra.mxu1 %v1594_v37 }
  0x77   : > { %1403 = vmatprep.subr.bf16.mxu1 %v1828_v18  ;;  %p1739_p9 = pnand %p1738_p7, %p1732_p2 }
  0x78   : > { %687 = vmatpush1.bf16.msra.mxu0 %v1584_v12 }
  0x79   : > { %688 = vmatprep.subr.bf16.mxu0 %v1585_v13 }
  0x7a   : > { %1404 = vmatpush3.bf16.msra.mxu1 %v1595_v38 }
  0x7b   : > { %1405 = vmatprep.subr.bf16.mxu1 %v1828_v18 }
  0x7c   : > { %689 = vmatpush1.bf16.msra.mxu0 %v1587_v14 }
  0x7d   : > { %690 = vmatprep.subr.bf16.mxu0 %v1588_v15 }
  0x7e   : > { %1406 = vmatpush3.bf16.msra.mxu1 %v1596_v39 }
  0x7f   : > { %1407 = vmatprep.subr.bf16.mxu1 %v1828_v18 }
  0x80   : > { %691 = vmatpush1.bf16.msra.mxu0 %v1590_v16 }
  0x81   : > { %1415 = vmatprep.subr.bf16.mxu0 %v1828_v18 }
  0x82   : > { %1408 = vmatpush3.bf16.msra.mxu1 %v1597_v40  ;;  %v1613_v40 = vld [vmem:[#allocation10 + $0x8] sm:$0xff]  }
  0x83   : > { %709 = vmatmul.mubr.bf16.vlgmr.msra.gmra.mxu0 %v2046_v17  ;;  %1409 = vmatprep.subr.bf16.mxu1 %v1828_v18 }
  0x84   : > { %1417 = vmatprep.mubr.msk.bf16.mxu0 %vm1829_vm0, %v1828_v18 }
  0x86   : > { %1410 = vmatpush3.bf16.msra.mxu1 %v1598_v41  ;;  %v1614_v41 = vld [vmem:[#allocation10] sm:$0xff]  }
  0x87   : > { %1421 = vmatprep.subr.bf16.mxu1 %v1828_v18 }
  0x89   : > { %1412 = vmatmul.mubr.bf16.vlgmr.msra.gmra.mxu1 %v2046_v17  ;;  %v1601_v17 = vld [vmem:[#allocation9 + $0x28] sm:$0xff]  }
  0x8a   : > { %1423 = vmatprep.mubr.msk.bf16.mxu1 %vm1829_vm0, %v1828_v18 }
 0x143   : > { %v710_v25 = vpop.f32.mrf.mxu0 }
 0x144   : > { %v711_v32 = vadd.f32 %v710_v25, %v536_v28  ;;  %v1608_v25 = vld [vmem:[#allocation10 + $0x30] sm:$0xff]   ;;  %v1611_v28 = vld [vmem:[#allocation10 + $0x18] sm:$0xff]  }
 0x145   : > { %v712_v26 = vpop.f32.mrf.mxu0 }
 0x146   : > { %v713_v27 = vadd.f32 %v712_v26, %v540_v23  ;;  %v757_v33 = vpack.c.bf16 %v711_v32, %v711_v32  ;;  %v1606_v23 = vld [vmem:[#allocation9] sm:$0xff]   ;;  %v1609_v26 = vld [vmem:[#allocation10 + $0x28] sm:$0xff]  }
 0x147   : > { %v714_v29 = vpop.f32.mrf.mxu0 }
 0x148   : > { %v758_v30 = vpack.c.bf16 %v713_v27, %v713_v27  ;;  %v1610_v27 = vld [vmem:[#allocation10 + $0x20] sm:$0xff]   ;;  %v1612_v29 = vld [vmem:[#allocation10 + $0x10] sm:$0xff]  }
 0x149   : > { %v715_v31 = vpop.f32.mrf.mxu0  ;;  %v751_v49 = vpop.f32.mrf.mxu1 }
 0x14a   : > { %1416 = vmatpush3.bf16.xpose.msra.mxu0 %v758_v30  ;;  %v752_v50 = vadd.f32 %v751_v49, %v544_v48 }
 0x14b   : > { %1427 = vmatprep.subr.bf16.mxu0 %v1828_v18  ;;  %v1413_v51 = vpop.f32.mrf.mxu1 }
 0x14c   : > { %v759_v52 = vpack.c.bf16 %v752_v50, %v752_v50  ;;  %v1357_v50 = vld [vmem:[%s2170_s8] ss:$0 sm:$0xff] }
 0x14d   : > { %v754_v53 = vpop.f32.mrf.mxu1 }
 0x14e   : > { %v819_v54 = vsel %vm817_vm2, %v759_v52, 0 }
 0x14f   : > { %v1414_v55 = vpop.f32.mrf.mxu1  ;;  %1422 = vmatpush3.bf16.msra.mxu1 %v819_v54 }
 0x150   : > { %1447 = vmatprep.subr.bf16.mxu1 %v1828_v18 }
 0x151   : > { %1418 = vmatmul.mubr.bf16.vlgmr.msra.gmra.mxu0 %v757_v33 }
 0x152   : > { %1443 = vmatprep.mubr.msk.bf16.mxu0 %vm1829_vm0, %v1828_v18  ;;  %1428 = vmatpush3.bf16.msra.mxu0 %v1599_v10 }
 0x153   : > { %1429 = vmatprep.subr.bf16.mxu0 %v1828_v18 }
 0x156   : > { %1430 = vmatpush3.bf16.msra.mxu0 %v1600_v11 }
 0x157   : > { %1431 = vmatprep.subr.bf16.mxu0 %v1828_v18 }
 0x15a   : > { %1432 = vmatpush3.bf16.msra.mxu0 %v1601_v17 }
 0x15b   : > { %1433 = vmatprep.subr.bf16.mxu0 %v1828_v18 }
 0x15e   : > { %1434 = vmatpush3.bf16.msra.mxu0 %v1602_v19 }
 0x15f   : > { %1435 = vmatprep.subr.bf16.mxu0 %v1828_v18 }
 0x162   : > { %1436 = vmatpush3.bf16.msra.mxu0 %v1603_v20 }
 0x163   : > { %1437 = vmatprep.subr.bf16.mxu0 %v1828_v18 }
 0x166   : > { %1438 = vmatpush3.bf16.msra.mxu0 %v1604_v21 }
 0x167   : > { %1439 = vmatprep.subr.bf16.mxu0 %v1828_v18 }
 0x16a   : > { %1440 = vmatpush3.bf16.msra.mxu0 %v1605_v22 }
 0x16b   : > { %1441 = vmatprep.subr.bf16.mxu0 %v1828_v18 }
 0x16e   : > { %1442 = vmatpush3.bf16.msra.mxu0 %v1606_v23 }
 0x211   : > { %v794_v42 = vpop.f32.mrf.mxu0 }
 0x212   : > { %v801_v43 = vsel %vm800_vm1, %v794_v42, -inf }
 0x213   : > { %802 = vmax.xlane.f32.xlu0 %v801_v43  ;;  %v1419_v44 = vpop.f32.mrf.mxu0 }
 0x215   : > { %v797_v45 = vpop.f32.mrf.mxu0 }
 0x217   : > { %v1420_v46 = vpop.f32.mrf.mxu0 }
 0x29c   : > { %v803_v56 = vpop.xlane.xlu0 %802 }
 0x29d   : > { %v804_v57 = vsub.f32 %v794_v42, %v803_v56  ;;  %v1340_v42 = vld [vmem:[%s2168_s6] ss:$0 sm:$0xff] }
 0x29f   : > { %v805_v58 = vmul.f32 1.442695, %v804_v57 }
 0x2a1   : > { %1615 = vpow2.f32 %v805_v58 }
 0x2ae   : > { %v1616_v59 = vpop.eup %1615 }
 0x2af   : > { %v807_v60 = vsel %vm800_vm1, %v1616_v59, 0.0 }
 0x2b0   : > { %808 = vadd.xlane.f32.xlu0 %v807_v60 }
 0x339   : > { %v809_v61 = vpop.xlane.xlu0 %808 }
 0x33a   : > { %1617 = vrcp.f32 %v809_v61 }
 0x347   : > { %v1618_v62 = vpop.eup %1617 }
 0x348   : > { %v811_v63 = vmul.f32 %v1618_v62, %v1616_v59 }
 0x34a   : > { %v812_v0 = vpack.c.bf16 %v811_v63, %v811_v63 }
 0x34c   : > { %1424 = vmatmul.mubr.msk.bf16.vlgmr.msra.gmra.mxu1 %vm800_vm1, %v812_v0 }
 0x34d   : > { %1463 = vmatprep.mubr.msk.bf16.mxu1 %vm1829_vm0, %v1828_v18  ;;  %1448 = vmatpush3.bf16.msra.mxu1 %v1607_v24 }
 0x34e   : > { %1449 = vmatprep.subr.bf16.mxu1 %v1828_v18 }
 0x351   : > { %1450 = vmatpush3.bf16.msra.mxu1 %v1608_v25 }
 0x352   : > { %1451 = vmatprep.subr.bf16.mxu1 %v1828_v18 }
 0x355   : > { %1452 = vmatpush3.bf16.msra.mxu1 %v1609_v26 }
 0x356   : > { %1453 = vmatprep.subr.bf16.mxu1 %v1828_v18 }
 0x359   : > { %1454 = vmatpush3.bf16.msra.mxu1 %v1610_v27 }
 0x35a   : > { %1455 = vmatprep.subr.bf16.mxu1 %v1828_v18 }
 0x35d   : > { %1456 = vmatpush3.bf16.msra.mxu1 %v1611_v28 }
 0x35e   : > { %1457 = vmatprep.subr.bf16.mxu1 %v1828_v18 }
 0x361   : > { %1458 = vmatpush3.bf16.msra.mxu1 %v1612_v29 }
 0x362   : > { %1459 = vmatprep.subr.bf16.mxu1 %v1828_v18 }
 0x365   : > { %1460 = vmatpush3.bf16.msra.mxu1 %v1613_v40 }
 0x366   : > { %1461 = vmatprep.subr.bf16.mxu1 %v1828_v18 }
 0x369   : > { %1462 = vmatpush3.bf16.msra.mxu1 %v1614_v41 }
 0x40c   : > { %v855_v3 = vpop.f32.mrf.mxu1 }
 0x40d   : > { %v856_v5 = vadd.f32 %v855_v3, %v813_v2  ;;  %v1358_v2 = vld [vmem:[%s2171_s9] ss:$0 sm:$0xff] }
 0x40e   : > { %v1425_v6 = vpop.f32.mrf.mxu1 }
 0x40f   : > { %v863_v7 = vmul.f32 %v2082_v4, %v856_v5  ;;  %v1359_v5 = vld [vmem:[%s2203_s10] ss:$0 sm:$0xff] }
 0x410   : > { %v858_v8 = vpop.f32.mrf.mxu1 }
 0x411   : > { %864 = vadd.xlane.f32.xlu1 %v863_v7 }
 0x412   : > { %v1426_v9 = vpop.f32.mrf.mxu1 }
 0x49a   : > { %v865_v12 = vpop.xlane.xlu1 %864 }
 0x49b   : > { %v866_v13 = vmul.f32 0.03125, %v865_v12 }
 0x49d   : > { %v867_v14 = vsub.f32 %v863_v7, %v866_v13 }
 0x49f   : > { %v868_v15 = vmul.f32 %v2082_v4, %v867_v14 }
 0x4a1   : > { %v869_v16 = vmul.f32 %v868_v15, %v868_v15 }
 0x4a3   : > { %870 = vadd.xlane.f32.xlu1 %v869_v16 }
 0x52c   : > { %v871_v30 = vpop.xlane.xlu1 %870 }
 0x52d   : > { %v872_v31 = vmul.f32 0.03125, %v871_v30 }
 0x52f   : > { %v873_v32 = vadd.f32 1e-05, %v872_v31 }
 0x531   : > { %1619 = vrsqrt.f32 %v873_v32 }
 0x53e   : > { %v1620_v33 = vpop.eup %1619 }
 0x53f   : > { %v875_v35 = vmul.f32 %v1620_v33, %v868_v15 }
 0x541   : > { %v882_v37 = vmul.f32 %v1338_v34, %v875_v35 }
 0x543   : > { %v889_v38 = vadd.f32 %v1339_v36, %v882_v37 }
 0x545   : > { %v893_v39 = vpack.c.bf16 %v889_v38, %v889_v38 }
 0x547   : > { %1444 = vmatmul.mubr.bf16.vlgmr.msra.gmra.mxu0 %v893_v39 }
 0x607   : > { %v999_v43 = vpop.f32.mrf.mxu0 }
 0x608   : > { %v1000_v44 = vadd.f32 %v1340_v42, %v999_v43 }
 0x609   : > { %v1445_v45 = vpop.f32.mrf.mxu0 }
 0x60a   : > { %v1005_v46 = vmax.f32 %v1000_v44, 0.0 }
 0x60b   : > { %v1002_v47 = vpop.f32.mrf.mxu0 }
 0x60c   : > { %v1007_v48 = vpack.c.bf16 %v1005_v46, %v1005_v46 }
 0x60d   : > { %v1446_v49 = vpop.f32.mrf.mxu0 }
 0x60e   : > { %1464 = vmatmul.mubr.bf16.vlgmr.msra.gmra.mxu1 %v1007_v48 }
 0x6ce   : > { %v1106_v51 = vpop.f32.mrf.mxu1 }
 0x6cf   : > { %v1125_v18 = vadd.f32 %v1357_v50, %v1106_v51 }
 0x6d0   : > { %v1465_v52 = vpop.f32.mrf.mxu1 }
 0x6d1   : > { %v1127_v53 = vadd.f32 %v1125_v18, %v889_v38 }
 0x6d2   : > { %v1109_v54 = vpop.f32.mrf.mxu1 }
 0x6d3   : > { %v1130_v55 = vmul.f32 %v2082_v4, %v1127_v53 }
 0x6d4   : > { %v1466_v56 = vpop.f32.mrf.mxu1 }
 0x6d5   : > { %1131 = vadd.xlane.f32.xlu0 %v1130_v55 }
 0x75e   : > { %v1132_v57 = vpop.xlane.xlu0 %1131 }
 0x75f   : > { %v1133_v58 = vmul.f32 0.03125, %v1132_v57 }
 0x761   : > { %v1134_v59 = vsub.f32 %v1130_v55, %v1133_v58 }
 0x763   : > { %v1135_v60 = vmul.f32 %v2082_v4, %v1134_v59 }
 0x765   : > { %v1136_v61 = vmul.f32 %v1135_v60, %v1135_v60 }
 0x767   : > { %1137 = vadd.xlane.f32.xlu1 %v1136_v61 }
 0x7f0   : > { %v1138_v62 = vpop.xlane.xlu1 %1137 }
 0x7f1   : > { %v1139_v63 = vmul.f32 0.03125, %v1138_v62 }
 0x7f3   : > { %v1140_v0 = vadd.f32 1e-05, %v1139_v63 }
 0x7f5   : > { %1621 = vrsqrt.f32 %v1140_v0 }
 0x802   : > { %v1622_v1 = vpop.eup %1621 }
 0x803   : > { %v1142_v3 = vmul.f32 %v1622_v1, %v1135_v60 }
 0x805   : > { %v1149_v6 = vmul.f32 %v1358_v2, %v1142_v3 }
 0x807   : > { %v1156_v4 = vadd.f32 %v1359_v5, %v1149_v6 }
 0x809   : > { %v1157_v7 = vpack.c.bf16 %v1156_v4, %v1156_v4 }
 0x80b   : > { %1158 = vst [vmem:[%s483_s7] sm:$0xf] %v1157_v7 }
 0x80c   : > { %1742 = shalt.err (!%p1739_p9)
}
 0x80d   : > { %s1743_s13 = scalar_lea.hbm %s1171_s24, 64  ;;  %s1747_s23 = scalar_lea.hbm %s2204_s16, 128 }
 0x80e   : > { %p1744_p13 = scmp.ne.s32.totalorder %s1171_s24, %s1743_s13  ;;  %p1748_p5 = scmp.lt.s32.totalorder %s1171_s24, %s2204_s16 }
 0x80f   : > { %p1749_p10 = scmp.lt.s32.totalorder %s1747_s23, %s1743_s13 }
 0x810   : > { %p1745_p12 = pnand %p1744_p13, %p1997_p6 }
 0x811   : > { %p1750_p11 = por %p1749_p10, %p1748_p5 }
 0x812   : > { %p1746_p0 = pneg %p1745_p12 }
 0x814   : > { %p1751_p8 = pnand %p1750_p11, %p1746_p0 }
 0x816   : > { %1754 = shalt.err (!%p1751_p8)
}
 0x817   : > { %1481 = dma.vmem_to_hbm [thread:$0]  (%p1997_p6), %s1174_s25, 64, %s1171_s24, %s1160_s28  }
 0x818 PF: > { %s2205_s5 = sld [smem:[#allocation17_spill]]  ;;  %p2208_p2 = scmp.ge.s32.totalorder %s1817_s22, 2 }
 0x819   : > { %s2206_s7 = sld [smem:[#allocation18_spill]] }
 0x81e   : > { %s1185_s27 = sand.u32 1, %s2205_s5  }
 0x81f   : > { %p2207_p3 = scmp.ne.s32.totalorder %s2206_s7, 0  ;;  %s1186_s29 = scalar_lea.sflag [#allocation6], %s1185_s27 }
 0x821   : > { %p1498_p1 = pnand %p2208_p2, %p2207_p3 }
 0x823   : > { %p1499_p4 = pneg %p1498_p1 }
 0x825   : > { %1792 = dma.done.wait (%p1499_p4), %s1186_s29, 64  }
 0x826   : > { %1794 = vsyncadd (%p1499_p4), %s1186_s29, 4294967232  ;;  %s29_s22 = sadd.s32 1, %s1817_s22   ;;  %s2209_s15 = sld [smem:[#allocation19_spill]] }
 0x827   : > { %p26_p7 = scmp.ge.s32.totalorder %s29_s22, 4   ;;  %s2210_s17 = smov %s1801_s18 }
 0x828   : > { %s2211_s18 = smov %s1805_s19  ;;  %s2212_s19 = smov %s2006_s12 }
 0x829   : > { %s2213_s20 = smov %s1813_s21  ;;  %28 = sbr.rel (!%p26_p7) target bundleno = 14 (0xe), region = 134 }
 0x82c   : > { %s2214_s21 = smov %s2209_s15 }
 0x82e   :  { %1191 = vsyncpa [#allocation5], 1 }
 0x82f   :  { %1193 = vsyncpa [#allocation5 + $0x1], 1 }
 0x830   :  { %1194 = vsyncpa [#allocation8], 1 }
 0x831   :  { %1195 = vsyncpa [#allocation11], 1 }
 0x832   :  { %1196 = vsyncpa [#allocation6], 1 }
 0x833   :  { %1198 = vsyncpa [#allocation6 + $0x1], 1 }

</bundles_post_ra>
